<compile_context>
chip_gen: v7x
topology: tpu7x:2x2x1
jax: 0.10.0
libtpu: 0.0.40
codegen_flags: <defaults>
</compile_context>

<pallas_src>
import math

import jax
import jax.numpy as jnp
from jax.experimental import pallas as pl
from jax.experimental.pallas import tpu as pltpu

# ----------------------------- config --------------------------------------
IMG_SIZE = 16
PATCH_SIZE = 4
IN_CHANNELS = 4
EMBED_DIM = 32
NUM_HEADS = 4
NUM_LAYERS = 2
NUM_CLASSES = 10
MLP_RATIO = 4.0
BATCH = 2                      # attention couples exactly these 2 batch elements

NUM_PATCHES = (IMG_SIZE // PATCH_SIZE) ** 2            # 16
SEQ = NUM_PATCHES + 1                                   # 17
SEQ_PAD = 24                                            # sublane-aligned per-batch slab
HEAD_DIM = EMBED_DIM // NUM_HEADS                       # 8
MLP_HIDDEN = int(EMBED_DIM * MLP_RATIO)                 # 128
PATCH_DIM = IN_CHANNELS * PATCH_SIZE * PATCH_SIZE       # 64
PEXT = PATCH_DIM + 2 + SEQ_PAD                          # pixels|bias sel|cls sel|pos one-hot = 90
NUM_CLASSES_PAD = 128                                   # lane-dense head / output
LN_EPS = 1e-5
ATTN_SCALE = 1.0 / math.sqrt(HEAD_DIM)

# ---- misc slab row layout (lane width 128) ----
R_WEMB = 0            # rows [0, PEXT)   cols [0, D)    extended patch projection
R_HEAD_W = 96         # rows [96, 128)   cols [0, 128)  head weight (classes padded)
R_HEAD_B = 128        # row  128         cols [0, 128)
R_NORM_G = 129        # row  129         cols [0, D)
R_NORM_B = 130        # row  130         cols [0, D)
R_HMASK = 136         # rows [136, 168)  cols [0, D)    block-diag same-head mask
MISC_ROWS = 168

# ---- per-block slab row layout (lane width 128) ----
B_WQKV = 0            # rows [0, 32)     cols [0, 96)
B_BQKV = 32           # row  32          cols [0, 96)
B_LN1G = 33
B_LN1B = 34
B_OUTB = 35
B_LN2G = 36
B_LN2B = 37
B_FC1B = 38           # cols [0, 128)
B_FC2B = 39
B_OUTW = 40           # rows [40, 72)    cols [0, 32)
B_FC1W = 72           # rows [72, 104)   cols [0, 128)
B_FC2W = 104          # rows [104, 232)  cols [0, 32)
BLOCK_ROWS = 232


# ----------------------------- kernel helpers -------------------------------
def _layernorm(x, g, b):
    mean = jnp.mean(x, axis=-1, keepdims=True)
    cen = x - mean
    var = jnp.mean(cen * cen, axis=-1, keepdims=True)
    return cen * jax.lax.rsqrt(var + LN_EPS) * g + b


def _gelu(y):
    # exact erf GELU (matches nn.GELU() default); erf runs on the EUP slot
    return 0.5 * y * (1.0 + jax.lax.erf(y * (1.0 / math.sqrt(2.0))))


def _dot(a, b):
    return jnp.dot(a, b, preferred_element_type=jnp.float32)


# ----------------------------- fused ViT kernel -----------------------------
def _vit_kernel(patches_ref, misc_ref, blk_ref, out_ref):
    D = EMBED_DIM

    w_embed = misc_ref[R_WEMB:R_WEMB + PEXT, 0:D]            # (90, 32)
    head_mask = misc_ref[R_HMASK:R_HMASK + D, 0:D]           # (32, 32) block-diag

    # Patch embedding: conv-as-matmul + conv bias + cls token + positional
    # embedding, all folded into ONE (48, 90) @ (90, 32) matmul.
    x = _dot(patches_ref[...], w_embed)                      # (B*SEQ_PAD, D)

    for l in range(NUM_LAYERS):                              # unrolled, weights VMEM-resident
        r0 = l * BLOCK_ROWS
        w_qkv = blk_ref[r0 + B_WQKV:r0 + B_WQKV + D, 0:3 * D]        # (32, 96)
        b_qkv = blk_ref[r0 + B_BQKV:r0 + B_BQKV + 1, 0:3 * D]        # (1, 96)
        ln1_g = blk_ref[r0 + B_LN1G:r0 + B_LN1G + 1, 0:D]
        ln1_b = blk_ref[r0 + B_LN1B:r0 + B_LN1B + 1, 0:D]
        out_b = blk_ref[r0 + B_OUTB:r0 + B_OUTB + 1, 0:D]
        ln2_g = blk_ref[r0 + B_LN2G:r0 + B_LN2G + 1, 0:D]
        ln2_b = blk_ref[r0 + B_LN2B:r0 + B_LN2B + 1, 0:D]
        fc1_b = blk_ref[r0 + B_FC1B:r0 + B_FC1B + 1, 0:MLP_HIDDEN]
        fc2_b = blk_ref[r0 + B_FC2B:r0 + B_FC2B + 1, 0:D]
        out_w = blk_ref[r0 + B_OUTW:r0 + B_OUTW + D, 0:D]            # (32, 32)
        fc1_w = blk_ref[r0 + B_FC1W:r0 + B_FC1W + D, 0:MLP_HIDDEN]   # (32, 128)
        fc2_w = blk_ref[r0 + B_FC2W:r0 + B_FC2W + MLP_HIDDEN, 0:D]   # (128, 32)

        # ---- LN1 + fused QKV projection on the batch-stacked matrix ----
        xn = _layernorm(x, ln1_g, ln1_b)
        qkv = _dot(xn, w_qkv) + b_qkv                        # (48, 96)
        q = qkv[:, 0:D]
        k = qkv[:, D:2 * D]
        v = qkv[:, 2 * D:3 * D]

        # ---- attention over the image-batch axis (batch_first=False quirk):
        # a 2-way softmax between the two batch elements per (token, head).
        # Swap the aligned 24-row halves to pair each row with its partner.
        k_sw = jnp.concatenate([k[SEQ_PAD:], k[:SEQ_PAD]], axis=0)
        v_sw = jnp.concatenate([v[SEQ_PAD:], v[:SEQ_PAD]], axis=0)

        # Block-diagonal mask matmul: per-head score replicated over the
        # head's columns -> the rest of attention is elementwise on (48, 32).
        s_self = _dot(q * k, head_mask) * ATTN_SCALE         # (48, 32)
        s_cross = _dot(q * k_sw, head_mask) * ATTN_SCALE
        m = jnp.maximum(s_self, s_cross)
        e_self = jnp.exp(s_self - m)
        e_cross = jnp.exp(s_cross - m)
        inv = pl.reciprocal(e_self + e_cross, approx=True)   # EUP, ~free
        o = (e_self * inv) * v + (e_cross * inv) * v_sw      # (48, 32)

        # TODO(synk): dropout (block-level + MHA-internal) omitted — eval-mode identity.
        x = x + _dot(o, out_w) + out_b

        # ---- LN2 + MLP (exact erf GELU) ----
        xn2 = _layernorm(x, ln2_g, ln2_b)
        h = _gelu(_dot(xn2, fc1_w) + fc1_b)                  # (48, 128)
        x = x + _dot(h, fc2_w) + fc2_b

    # ---- final LN + classifier head on both CLS rows at once, one store ----
    norm_g = misc_ref[R_NORM_G:R_NORM_G + 1, 0:D]
    norm_b = misc_ref[R_NORM_B:R_NORM_B + 1, 0:D]
    head_w = misc_ref[R_HEAD_W:R_HEAD_W + D, :]              # (32, 128), classes padded
    head_b = misc_ref[R_HEAD_B:R_HEAD_B + 1, :]              # (1, 128)

    cls = jnp.concatenate([x[0:1, :], x[SEQ_PAD:SEQ_PAD + 1, :]], axis=0)  # (2, 32)
    cls = _layernorm(cls, norm_g, norm_b)
    out_ref[...] = (_dot(cls, head_w) + head_b).astype(out_ref.dtype)


# ----------------------------- host-side packing ----------------------------
def pack_params(params):
    """Pack every weight/bias into two (rows, 128) f32 slabs (done once)."""
    D = EMBED_DIM

    misc = jnp.zeros((MISC_ROWS, 128), jnp.float32)
    misc = misc.at[0:PATCH_DIM, 0:D].set(params["proj_w"])
    misc = misc.at[PATCH_DIM, 0:D].set(params["proj_b"])
    misc = misc.at[PATCH_DIM + 1, 0:D].set(params["cls_token"].reshape(D))
    misc = misc.at[PATCH_DIM + 2:PATCH_DIM + 2 + SEQ, 0:D].set(
        params["pos_emb"].reshape(SEQ, D))
    misc = misc.at[R_HEAD_W:R_HEAD_W + D, 0:NUM_CLASSES].set(params["head_w"])
    misc = misc.at[R_HEAD_B, 0:NUM_CLASSES].set(params["head_b"])
    misc = misc.at[R_NORM_G, 0:D].set(params["norm_g"])
    misc = misc.at[R_NORM_B, 0:D].set(params["norm_b"])
    head_mask = jnp.kron(jnp.eye(NUM_HEADS, dtype=jnp.float32),
                         jnp.ones((HEAD_DIM, HEAD_DIM), jnp.float32))
    misc = misc.at[R_HMASK:R_HMASK + D, 0:D].set(head_mask)

    blocks = []
    for blk in params["blocks"]:
        s = jnp.zeros((BLOCK_ROWS, 128), jnp.float32)
        s = s.at[B_WQKV:B_WQKV + D, 0:3 * D].set(blk["in_proj_w"])
        s = s.at[B_BQKV, 0:3 * D].set(blk["in_proj_b"])
        s = s.at[B_LN1G, 0:D].set(blk["ln1_g"])
        s = s.at[B_LN1B, 0:D].set(blk["ln1_b"])
        s = s.at[B_OUTB, 0:D].set(blk["out_b"])
        s = s.at[B_LN2G, 0:D].set(blk["ln2_g"])
        s = s.at[B_LN2B, 0:D].set(blk["ln2_b"])
        s = s.at[B_FC1B, 0:MLP_HIDDEN].set(blk["fc1_b"])
        s = s.at[B_FC2B, 0:D].set(blk["fc2_b"])
        s = s.at[B_OUTW:B_OUTW + D, 0:D].set(blk["out_w"])
        s = s.at[B_FC1W:B_FC1W + D, 0:MLP_HIDDEN].set(blk["fc1_w"])
        s = s.at[B_FC2W:B_FC2W + MLP_HIDDEN, 0:D].set(blk["fc2_w"])
        blocks.append(s)
    block_slab = jnp.concatenate(blocks, axis=0)             # (NUM_LAYERS*232, 128)
    return misc, block_slab


# ----------------------------- forward wrapper -------------------------------
def _vmem_spec():
    return pl.BlockSpec(memory_space=pltpu.MemorySpace.VMEM)


@jax.jit
def vit_forward(x, misc_slab, block_slab):
    """x: (B, C, H, W) float32, NCHW exactly like the PyTorch module."""
    B, C, H, W = x.shape
    assert B == BATCH  # the batch_first=False attention couples exactly 2 elements
    p = PATCH_SIZE
    hp, wp = H // p, W // p

    # Conv2d(kernel=stride=patch) == patch extraction; projection runs in-kernel.
    patches = x.reshape(B, C, hp, p, wp, p)
    patches = jnp.transpose(patches, (0, 2, 4, 1, 3, 5)).reshape(B, hp * wp, PATCH_DIM)

    # Extended rows: [pixels | conv-bias sel | cls sel | pos one-hot], padded to
    # SEQ_PAD rows per batch element so the batch-stacked slab is sublane aligned.
    rows = jnp.zeros((B, SEQ_PAD, PEXT), jnp.float32)
    rows = rows.at[:, 1:SEQ, 0:PATCH_DIM].set(patches)
    rows = rows.at[:, 1:SEQ, PATCH_DIM].set(1.0)             # conv bias selector
    rows = rows.at[:, 0, PATCH_DIM + 1].set(1.0)             # cls-token selector
    eye = jnp.eye(SEQ_PAD, dtype=jnp.float32)
    rows = rows.at[:, :, PATCH_DIM + 2:PATCH_DIM + 2 + SEQ_PAD].set(
        jnp.broadcast_to(eye, (B, SEQ_PAD, SEQ_PAD)))        # pos-row selectors
    patches_stacked = rows.reshape(B * SEQ_PAD, PEXT)        # (48, 90)

    logits_pad = pl.pallas_call(
        _vit_kernel,
        out_shape=jax.ShapeDtypeStruct((B, NUM_CLASSES_PAD), jnp.float32),
        in_specs=[_vmem_spec(), _vmem_spec(), _vmem_spec()],
        out_specs=_vmem_spec(),
    )(patches_stacked, misc_slab, block_slab)
    return logits_pad[:, :NUM_CLASSES]


# ----------------------------- params --------------------------------------
def init_params(key):
    def nrm(k, shape, scale=0.02):
        return scale * jax.random.normal(k, shape, dtype=jnp.float32)

    keys = jax.random.split(key, 8 + NUM_LAYERS)
    params = {
        "proj_w": nrm(keys[0], (PATCH_DIM, EMBED_DIM)),
        "proj_b": jnp.zeros((EMBED_DIM,), jnp.float32),
        "pos_emb": jax.random.normal(keys[1], (1, SEQ, EMBED_DIM), jnp.float32),
        "cls_token": jax.random.normal(keys[2], (1, 1, EMBED_DIM), jnp.float32),
        "norm_g": jnp.ones((EMBED_DIM,), jnp.float32),
        "norm_b": jnp.zeros((EMBED_DIM,), jnp.float32),
        "head_w": nrm(keys[3], (EMBED_DIM, NUM_CLASSES)),
        "head_b": jnp.zeros((NUM_CLASSES,), jnp.float32),
        "blocks": [],
    }
    for l in range(NUM_LAYERS):
        bk = jax.random.split(keys[8 + l], 4)
        params["blocks"].append({
            "ln1_g": jnp.ones((EMBED_DIM,), jnp.float32),
            "ln1_b": jnp.zeros((EMBED_DIM,), jnp.float32),
            "in_proj_w": nrm(bk[0], (EMBED_DIM, 3 * EMBED_DIM)),
            "in_proj_b": jnp.zeros((3 * EMBED_DIM,), jnp.float32),
            "out_w": nrm(bk[1], (EMBED_DIM, EMBED_DIM)),
            "out_b": jnp.zeros((EMBED_DIM,), jnp.float32),
            "ln2_g": jnp.ones((EMBED_DIM,), jnp.float32),
            "ln2_b": jnp.zeros((EMBED_DIM,), jnp.float32),
            "fc1_w": nrm(bk[2], (EMBED_DIM, MLP_HIDDEN)),
            "fc1_b": jnp.zeros((MLP_HIDDEN,), jnp.float32),
            "fc2_w": nrm(bk[3], (MLP_HIDDEN, EMBED_DIM)),
            "fc2_b": jnp.zeros((EMBED_DIM,), jnp.float32),
        })
    return params


# ----------------------------- main -----------------------------------------
if __name__ == "__main__":
    key = jax.random.PRNGKey(0)
    pkey, xkey = jax.random.split(key)
    params = init_params(pkey)
    misc_slab, block_slab = pack_params(params)          # host-side, once
    x = jax.random.normal(xkey, (BATCH, IN_CHANNELS, IMG_SIZE, IMG_SIZE), jnp.float32)

    logits = vit_forward(x, misc_slab, block_slab)
    logits = jax.block_until_ready(logits)
    assert logits.shape == (BATCH, NUM_CLASSES), logits.shape
    assert bool(jnp.all(jnp.isfinite(logits)))
    print("KERNEL_OK")
</pallas_src>

<mosaic_0001>
module attributes {stable_mosaic.version = 11 : i64} {
  func.func @_vit_kernel(%arg0: memref<48x90xf32, #tpu.memory_space<vmem>>, %arg1: memref<168x128xf32, #tpu.memory_space<vmem>>, %arg2: memref<464x128xf32, #tpu.memory_space<vmem>>, %arg3: memref<2x128xf32, #tpu.memory_space<vmem>>) attributes {dimension_semantics = [], scalar_prefetch = 0 : i64, scratch_operands = 0 : i64, tpu.core_type = #tpu.core_type<tc>} {
    %c0 = arith.constant 0 : index
    %c0_0 = arith.constant 0 : index
    %0 = vector.load %arg1[%c0, %c0_0] : memref<168x128xf32, #tpu.memory_space<vmem>>, vector<90x32xf32>
    %c136 = arith.constant 136 : index
    %c0_1 = arith.constant 0 : index
    %1 = vector.load %arg1[%c136, %c0_1] : memref<168x128xf32, #tpu.memory_space<vmem>>, vector<32x32xf32>
    %c0_2 = arith.constant 0 : index
    %c0_3 = arith.constant 0 : index
    %2 = vector.load %arg0[%c0_2, %c0_3] : memref<48x90xf32, #tpu.memory_space<vmem>>, vector<48x90xf32>
    %cst = arith.constant dense<0.000000e+00> : vector<48x32xf32>
    %3 = tpu.matmul %2, %0, %cst {dimension_numbers = #tpu.dot_dimension_numbers<[1], [0], [0], [1], [0, 0, 1, 1], [], []>} : vector<48x90xf32>, vector<90x32xf32>, vector<48x32xf32> -> vector<48x32xf32>
    %c0_4 = arith.constant 0 : index
    %c0_5 = arith.constant 0 : index
    %4 = vector.load %arg2[%c0_4, %c0_5] : memref<464x128xf32, #tpu.memory_space<vmem>>, vector<32x96xf32>
    %c32 = arith.constant 32 : index
    %c0_6 = arith.constant 0 : index
    %5 = vector.load %arg2[%c32, %c0_6] : memref<464x128xf32, #tpu.memory_space<vmem>>, vector<1x96xf32>
    %c33 = arith.constant 33 : index
    %c0_7 = arith.constant 0 : index
    %6 = vector.load %arg2[%c33, %c0_7] : memref<464x128xf32, #tpu.memory_space<vmem>>, vector<1x32xf32>
    %c34 = arith.constant 34 : index
    %c0_8 = arith.constant 0 : index
    %7 = vector.load %arg2[%c34, %c0_8] : memref<464x128xf32, #tpu.memory_space<vmem>>, vector<1x32xf32>
    %c35 = arith.constant 35 : index
    %c0_9 = arith.constant 0 : index
    %8 = vector.load %arg2[%c35, %c0_9] : memref<464x128xf32, #tpu.memory_space<vmem>>, vector<1x32xf32>
    %c36 = arith.constant 36 : index
    %c0_10 = arith.constant 0 : index
    %9 = vector.load %arg2[%c36, %c0_10] : memref<464x128xf32, #tpu.memory_space<vmem>>, vector<1x32xf32>
    %c37 = arith.constant 37 : index
    %c0_11 = arith.constant 0 : index
    %10 = vector.load %arg2[%c37, %c0_11] : memref<464x128xf32, #tpu.memory_space<vmem>>, vector<1x32xf32>
    %c38 = arith.constant 38 : index
    %c0_12 = arith.constant 0 : index
    %11 = vector.load %arg2[%c38, %c0_12] : memref<464x128xf32, #tpu.memory_space<vmem>>, vector<1x128xf32>
    %c39 = arith.constant 39 : index
    %c0_13 = arith.constant 0 : index
    %12 = vector.load %arg2[%c39, %c0_13] : memref<464x128xf32, #tpu.memory_space<vmem>>, vector<1x32xf32>
    %c40 = arith.constant 40 : index
    %c0_14 = arith.constant 0 : index
    %13 = vector.load %arg2[%c40, %c0_14] : memref<464x128xf32, #tpu.memory_space<vmem>>, vector<32x32xf32>
    %c72 = arith.constant 72 : index
    %c0_15 = arith.constant 0 : index
    %14 = vector.load %arg2[%c72, %c0_15] : memref<464x128xf32, #tpu.memory_space<vmem>>, vector<32x128xf32>
    %c104 = arith.constant 104 : index
    %c0_16 = arith.constant 0 : index
    %15 = vector.load %arg2[%c104, %c0_16] : memref<464x128xf32, #tpu.memory_space<vmem>>, vector<128x32xf32>
    %cst_17 = arith.constant dense<0.000000e+00> : vector<48xf32>
    %16 = vector.multi_reduction <add>, %3, %cst_17 [1] : vector<48x32xf32> to vector<48xf32>
    %17 = vector.shape_cast %16 : vector<48xf32> to vector<48x1xf32>
    %cst_18 = arith.constant 3.200000e+01 : f32
    %18 = vector.broadcast %cst_18 : f32 to vector<48x1xf32>
    %19 = arith.divf %17, %18 : vector<48x1xf32>
    %20 = vector.broadcast %19 : vector<48x1xf32> to vector<48x32xf32>
    %21 = arith.subf %3, %20 : vector<48x32xf32>
    %22 = arith.mulf %21, %21 : vector<48x32xf32>
    %cst_19 = arith.constant dense<0.000000e+00> : vector<48xf32>
    %23 = vector.multi_reduction <add>, %22, %cst_19 [1] : vector<48x32xf32> to vector<48xf32>
    %24 = vector.shape_cast %23 : vector<48xf32> to vector<48x1xf32>
    %cst_20 = arith.constant 3.200000e+01 : f32
    %25 = vector.broadcast %cst_20 : f32 to vector<48x1xf32>
    %26 = arith.divf %24, %25 : vector<48x1xf32>
    %cst_21 = arith.constant 9.99999974E-6 : f32
    %27 = vector.broadcast %cst_21 : f32 to vector<48x1xf32>
    %28 = arith.addf %26, %27 : vector<48x1xf32>
    %29 = math.rsqrt %28 : vector<48x1xf32>
    %30 = vector.broadcast %29 : vector<48x1xf32> to vector<48x32xf32>
    %31 = arith.mulf %21, %30 : vector<48x32xf32>
    %32 = vector.broadcast %6 : vector<1x32xf32> to vector<48x32xf32>
    %33 = arith.mulf %31, %32 : vector<48x32xf32>
    %34 = vector.broadcast %7 : vector<1x32xf32> to vector<48x32xf32>
    %35 = arith.addf %33, %34 : vector<48x32xf32>
    %cst_22 = arith.constant dense<0.000000e+00> : vector<48x96xf32>
    %36 = tpu.matmul %35, %4, %cst_22 {dimension_numbers = #tpu.dot_dimension_numbers<[1], [0], [0], [1], [0, 0, 1, 1], [], []>} : vector<48x32xf32>, vector<32x96xf32>, vector<48x96xf32> -> vector<48x96xf32>
    %37 = vector.broadcast %5 : vector<1x96xf32> to vector<48x96xf32>
    %38 = arith.addf %36, %37 : vector<48x96xf32>
    %39 = vector.extract_strided_slice %38 {offsets = [0, 0], sizes = [48, 32], strides = [1, 1]} : vector<48x96xf32> to vector<48x32xf32>
    %40 = vector.extract_strided_slice %38 {offsets = [0, 32], sizes = [48, 32], strides = [1, 1]} : vector<48x96xf32> to vector<48x32xf32>
    %41 = vector.extract_strided_slice %38 {offsets = [0, 64], sizes = [48, 32], strides = [1, 1]} : vector<48x96xf32> to vector<48x32xf32>
    %42 = vector.extract_strided_slice %40 {offsets = [24, 0], sizes = [24, 32], strides = [1, 1]} : vector<48x32xf32> to vector<24x32xf32>
    %43 = vector.extract_strided_slice %40 {offsets = [0, 0], sizes = [24, 32], strides = [1, 1]} : vector<48x32xf32> to vector<24x32xf32>
    %44 = tpu.concatenate %42, %43 in 0 : vector<24x32xf32>, vector<24x32xf32> -> vector<48x32xf32>
    %45 = vector.extract_strided_slice %41 {offsets = [24, 0], sizes = [24, 32], strides = [1, 1]} : vector<48x32xf32> to vector<24x32xf32>
    %46 = vector.extract_strided_slice %41 {offsets = [0, 0], sizes = [24, 32], strides = [1, 1]} : vector<48x32xf32> to vector<24x32xf32>
    %47 = tpu.concatenate %45, %46 in 0 : vector<24x32xf32>, vector<24x32xf32> -> vector<48x32xf32>
    %48 = arith.mulf %39, %40 : vector<48x32xf32>
    %cst_23 = arith.constant dense<0.000000e+00> : vector<48x32xf32>
    %49 = tpu.matmul %48, %1, %cst_23 {dimension_numbers = #tpu.dot_dimension_numbers<[1], [0], [0], [1], [0, 0, 1, 1], [], []>} : vector<48x32xf32>, vector<32x32xf32>, vector<48x32xf32> -> vector<48x32xf32>
    %cst_24 = arith.constant 0.353553385 : f32
    %50 = vector.broadcast %cst_24 : f32 to vector<48x32xf32>
    %51 = arith.mulf %49, %50 : vector<48x32xf32>
    %52 = arith.mulf %39, %44 : vector<48x32xf32>
    %cst_25 = arith.constant dense<0.000000e+00> : vector<48x32xf32>
    %53 = tpu.matmul %52, %1, %cst_25 {dimension_numbers = #tpu.dot_dimension_numbers<[1], [0], [0], [1], [0, 0, 1, 1], [], []>} : vector<48x32xf32>, vector<32x32xf32>, vector<48x32xf32> -> vector<48x32xf32>
    %cst_26 = arith.constant 0.353553385 : f32
    %54 = vector.broadcast %cst_26 : f32 to vector<48x32xf32>
    %55 = arith.mulf %53, %54 : vector<48x32xf32>
    %56 = arith.maximumf %51, %55 : vector<48x32xf32>
    %57 = arith.subf %51, %56 : vector<48x32xf32>
    %58 = math.exp %57 : vector<48x32xf32>
    %59 = arith.subf %55, %56 : vector<48x32xf32>
    %60 = math.exp %59 : vector<48x32xf32>
    %61 = arith.addf %58, %60 : vector<48x32xf32>
    %62 = tpu.reciprocal %61 {approx = true} : vector<48x32xf32> -> vector<48x32xf32>
    %63 = arith.mulf %58, %62 : vector<48x32xf32>
    %64 = arith.mulf %63, %41 : vector<48x32xf32>
    %65 = arith.mulf %60, %62 : vector<48x32xf32>
    %66 = arith.mulf %65, %47 : vector<48x32xf32>
    %67 = arith.addf %64, %66 : vector<48x32xf32>
    %cst_27 = arith.constant dense<0.000000e+00> : vector<48x32xf32>
    %68 = tpu.matmul %67, %13, %cst_27 {dimension_numbers = #tpu.dot_dimension_numbers<[1], [0], [0], [1], [0, 0, 1, 1], [], []>} : vector<48x32xf32>, vector<32x32xf32>, vector<48x32xf32> -> vector<48x32xf32>
    %69 = arith.addf %3, %68 : vector<48x32xf32>
    %70 = vector.broadcast %8 : vector<1x32xf32> to vector<48x32xf32>
    %71 = arith.addf %69, %70 : vector<48x32xf32>
    %cst_28 = arith.constant dense<0.000000e+00> : vector<48xf32>
    %72 = vector.multi_reduction <add>, %71, %cst_28 [1] : vector<48x32xf32> to vector<48xf32>
    %73 = vector.shape_cast %72 : vector<48xf32> to vector<48x1xf32>
    %cst_29 = arith.constant 3.200000e+01 : f32
    %74 = vector.broadcast %cst_29 : f32 to vector<48x1xf32>
    %75 = arith.divf %73, %74 : vector<48x1xf32>
    %76 = vector.broadcast %75 : vector<48x1xf32> to vector<48x32xf32>
    %77 = arith.subf %71, %76 : vector<48x32xf32>
    %78 = arith.mulf %77, %77 : vector<48x32xf32>
    %cst_30 = arith.constant dense<0.000000e+00> : vector<48xf32>
    %79 = vector.multi_reduction <add>, %78, %cst_30 [1] : vector<48x32xf32> to vector<48xf32>
    %80 = vector.shape_cast %79 : vector<48xf32> to vector<48x1xf32>
    %cst_31 = arith.constant 3.200000e+01 : f32
    %81 = vector.broadcast %cst_31 : f32 to vector<48x1xf32>
    %82 = arith.divf %80, %81 : vector<48x1xf32>
    %cst_32 = arith.constant 9.99999974E-6 : f32
    %83 = vector.broadcast %cst_32 : f32 to vector<48x1xf32>
    %84 = arith.addf %82, %83 : vector<48x1xf32>
    %85 = math.rsqrt %84 : vector<48x1xf32>
    %86 = vector.broadcast %85 : vector<48x1xf32> to vector<48x32xf32>
    %87 = arith.mulf %77, %86 : vector<48x32xf32>
    %88 = vector.broadcast %9 : vector<1x32xf32> to vector<48x32xf32>
    %89 = arith.mulf %87, %88 : vector<48x32xf32>
    %90 = vector.broadcast %10 : vector<1x32xf32> to vector<48x32xf32>
    %91 = arith.addf %89, %90 : vector<48x32xf32>
    %cst_33 = arith.constant dense<0.000000e+00> : vector<48x128xf32>
    %92 = tpu.matmul %91, %14, %cst_33 {dimension_numbers = #tpu.dot_dimension_numbers<[1], [0], [0], [1], [0, 0, 1, 1], [], []>} : vector<48x32xf32>, vector<32x128xf32>, vector<48x128xf32> -> vector<48x128xf32>
    %93 = vector.broadcast %11 : vector<1x128xf32> to vector<48x128xf32>
    %94 = arith.addf %92, %93 : vector<48x128xf32>
    %cst_34 = arith.constant 5.000000e-01 : f32
    %95 = vector.broadcast %cst_34 : f32 to vector<48x128xf32>
    %96 = arith.mulf %95, %94 : vector<48x128xf32>
    %cst_35 = arith.constant 0.707106769 : f32
    %97 = vector.broadcast %cst_35 : f32 to vector<48x128xf32>
    %98 = arith.mulf %94, %97 : vector<48x128xf32>
    %99 = math.erf %98 : vector<48x128xf32>
    %cst_36 = arith.constant 1.000000e+00 : f32
    %100 = vector.broadcast %cst_36 : f32 to vector<48x128xf32>
    %101 = arith.addf %100, %99 : vector<48x128xf32>
    %102 = arith.mulf %96, %101 : vector<48x128xf32>
    %cst_37 = arith.constant dense<0.000000e+00> : vector<48x32xf32>
    %103 = tpu.matmul %102, %15, %cst_37 {dimension_numbers = #tpu.dot_dimension_numbers<[1], [0], [0], [1], [0, 0, 1, 1], [], []>} : vector<48x128xf32>, vector<128x32xf32>, vector<48x32xf32> -> vector<48x32xf32>
    %104 = arith.addf %71, %103 : vector<48x32xf32>
    %105 = vector.broadcast %12 : vector<1x32xf32> to vector<48x32xf32>
    %106 = arith.addf %104, %105 : vector<48x32xf32>
    %c232 = arith.constant 232 : index
    %c0_38 = arith.constant 0 : index
    %107 = vector.load %arg2[%c232, %c0_38] : memref<464x128xf32, #tpu.memory_space<vmem>>, vector<32x96xf32>
    %c264 = arith.constant 264 : index
    %c0_39 = arith.constant 0 : index
    %108 = vector.load %arg2[%c264, %c0_39] : memref<464x128xf32, #tpu.memory_space<vmem>>, vector<1x96xf32>
    %c265 = arith.constant 265 : index
    %c0_40 = arith.constant 0 : index
    %109 = vector.load %arg2[%c265, %c0_40] : memref<464x128xf32, #tpu.memory_space<vmem>>, vector<1x32xf32>
    %c266 = arith.constant 266 : index
    %c0_41 = arith.constant 0 : index
    %110 = vector.load %arg2[%c266, %c0_41] : memref<464x128xf32, #tpu.memory_space<vmem>>, vector<1x32xf32>
    %c267 = arith.constant 267 : index
    %c0_42 = arith.constant 0 : index
    %111 = vector.load %arg2[%c267, %c0_42] : memref<464x128xf32, #tpu.memory_space<vmem>>, vector<1x32xf32>
    %c268 = arith.constant 268 : index
    %c0_43 = arith.constant 0 : index
    %112 = vector.load %arg2[%c268, %c0_43] : memref<464x128xf32, #tpu.memory_space<vmem>>, vector<1x32xf32>
    %c269 = arith.constant 269 : index
    %c0_44 = arith.constant 0 : index
    %113 = vector.load %arg2[%c269, %c0_44] : memref<464x128xf32, #tpu.memory_space<vmem>>, vector<1x32xf32>
    %c270 = arith.constant 270 : index
    %c0_45 = arith.constant 0 : index
    %114 = vector.load %arg2[%c270, %c0_45] : memref<464x128xf32, #tpu.memory_space<vmem>>, vector<1x128xf32>
    %c271 = arith.constant 271 : index
    %c0_46 = arith.constant 0 : index
    %115 = vector.load %arg2[%c271, %c0_46] : memref<464x128xf32, #tpu.memory_space<vmem>>, vector<1x32xf32>
    %c272 = arith.constant 272 : index
    %c0_47 = arith.constant 0 : index
    %116 = vector.load %arg2[%c272, %c0_47] : memref<464x128xf32, #tpu.memory_space<vmem>>, vector<32x32xf32>
    %c304 = arith.constant 304 : index
    %c0_48 = arith.constant 0 : index
    %117 = vector.load %arg2[%c304, %c0_48] : memref<464x128xf32, #tpu.memory_space<vmem>>, vector<32x128xf32>
    %c336 = arith.constant 336 : index
    %c0_49 = arith.constant 0 : index
    %118 = vector.load %arg2[%c336, %c0_49] : memref<464x128xf32, #tpu.memory_space<vmem>>, vector<128x32xf32>
    %cst_50 = arith.constant dense<0.000000e+00> : vector<48xf32>
    %119 = vector.multi_reduction <add>, %106, %cst_50 [1] : vector<48x32xf32> to vector<48xf32>
    %120 = vector.shape_cast %119 : vector<48xf32> to vector<48x1xf32>
    %cst_51 = arith.constant 3.200000e+01 : f32
    %121 = vector.broadcast %cst_51 : f32 to vector<48x1xf32>
    %122 = arith.divf %120, %121 : vector<48x1xf32>
    %123 = vector.broadcast %122 : vector<48x1xf32> to vector<48x32xf32>
    %124 = arith.subf %106, %123 : vector<48x32xf32>
    %125 = arith.mulf %124, %124 : vector<48x32xf32>
    %cst_52 = arith.constant dense<0.000000e+00> : vector<48xf32>
    %126 = vector.multi_reduction <add>, %125, %cst_52 [1] : vector<48x32xf32> to vector<48xf32>
    %127 = vector.shape_cast %126 : vector<48xf32> to vector<48x1xf32>
    %cst_53 = arith.constant 3.200000e+01 : f32
    %128 = vector.broadcast %cst_53 : f32 to vector<48x1xf32>
    %129 = arith.divf %127, %128 : vector<48x1xf32>
    %cst_54 = arith.constant 9.99999974E-6 : f32
    %130 = vector.broadcast %cst_54 : f32 to vector<48x1xf32>
    %131 = arith.addf %129, %130 : vector<48x1xf32>
    %132 = math.rsqrt %131 : vector<48x1xf32>
    %133 = vector.broadcast %132 : vector<48x1xf32> to vector<48x32xf32>
    %134 = arith.mulf %124, %133 : vector<48x32xf32>
    %135 = vector.broadcast %109 : vector<1x32xf32> to vector<48x32xf32>
    %136 = arith.mulf %134, %135 : vector<48x32xf32>
    %137 = vector.broadcast %110 : vector<1x32xf32> to vector<48x32xf32>
    %138 = arith.addf %136, %137 : vector<48x32xf32>
    %cst_55 = arith.constant dense<0.000000e+00> : vector<48x96xf32>
    %139 = tpu.matmul %138, %107, %cst_55 {dimension_numbers = #tpu.dot_dimension_numbers<[1], [0], [0], [1], [0, 0, 1, 1], [], []>} : vector<48x32xf32>, vector<32x96xf32>, vector<48x96xf32> -> vector<48x96xf32>
    %140 = vector.broadcast %108 : vector<1x96xf32> to vector<48x96xf32>
    %141 = arith.addf %139, %140 : vector<48x96xf32>
    %142 = vector.extract_strided_slice %141 {offsets = [0, 0], sizes = [48, 32], strides = [1, 1]} : vector<48x96xf32> to vector<48x32xf32>
    %143 = vector.extract_strided_slice %141 {offsets = [0, 32], sizes = [48, 32], strides = [1, 1]} : vector<48x96xf32> to vector<48x32xf32>
    %144 = vector.extract_strided_slice %141 {offsets = [0, 64], sizes = [48, 32], strides = [1, 1]} : vector<48x96xf32> to vector<48x32xf32>
    %145 = vector.extract_strided_slice %143 {offsets = [24, 0], sizes = [24, 32], strides = [1, 1]} : vector<48x32xf32> to vector<24x32xf32>
    %146 = vector.extract_strided_slice %143 {offsets = [0, 0], sizes = [24, 32], strides = [1, 1]} : vector<48x32xf32> to vector<24x32xf32>
    %147 = tpu.concatenate %145, %146 in 0 : vector<24x32xf32>, vector<24x32xf32> -> vector<48x32xf32>
    %148 = vector.extract_strided_slice %144 {offsets = [24, 0], sizes = [24, 32], strides = [1, 1]} : vector<48x32xf32> to vector<24x32xf32>
    %149 = vector.extract_strided_slice %144 {offsets = [0, 0], sizes = [24, 32], strides = [1, 1]} : vector<48x32xf32> to vector<24x32xf32>
    %150 = tpu.concatenate %148, %149 in 0 : vector<24x32xf32>, vector<24x32xf32> -> vector<48x32xf32>
    %151 = arith.mulf %142, %143 : vector<48x32xf32>
    %cst_56 = arith.constant dense<0.000000e+00> : vector<48x32xf32>
    %152 = tpu.matmul %151, %1, %cst_56 {dimension_numbers = #tpu.dot_dimension_numbers<[1], [0], [0], [1], [0, 0, 1, 1], [], []>} : vector<48x32xf32>, vector<32x32xf32>, vector<48x32xf32> -> vector<48x32xf32>
    %cst_57 = arith.constant 0.353553385 : f32
    %153 = vector.broadcast %cst_57 : f32 to vector<48x32xf32>
    %154 = arith.mulf %152, %153 : vector<48x32xf32>
    %155 = arith.mulf %142, %147 : vector<48x32xf32>
    %cst_58 = arith.constant dense<0.000000e+00> : vector<48x32xf32>
    %156 = tpu.matmul %155, %1, %cst_58 {dimension_numbers = #tpu.dot_dimension_numbers<[1], [0], [0], [1], [0, 0, 1, 1], [], []>} : vector<48x32xf32>, vector<32x32xf32>, vector<48x32xf32> -> vector<48x32xf32>
    %cst_59 = arith.constant 0.353553385 : f32
    %157 = vector.broadcast %cst_59 : f32 to vector<48x32xf32>
    %158 = arith.mulf %156, %157 : vector<48x32xf32>
    %159 = arith.maximumf %154, %158 : vector<48x32xf32>
    %160 = arith.subf %154, %159 : vector<48x32xf32>
    %161 = math.exp %160 : vector<48x32xf32>
    %162 = arith.subf %158, %159 : vector<48x32xf32>
    %163 = math.exp %162 : vector<48x32xf32>
    %164 = arith.addf %161, %163 : vector<48x32xf32>
    %165 = tpu.reciprocal %164 {approx = true} : vector<48x32xf32> -> vector<48x32xf32>
    %166 = arith.mulf %161, %165 : vector<48x32xf32>
    %167 = arith.mulf %166, %144 : vector<48x32xf32>
    %168 = arith.mulf %163, %165 : vector<48x32xf32>
    %169 = arith.mulf %168, %150 : vector<48x32xf32>
    %170 = arith.addf %167, %169 : vector<48x32xf32>
    %cst_60 = arith.constant dense<0.000000e+00> : vector<48x32xf32>
    %171 = tpu.matmul %170, %116, %cst_60 {dimension_numbers = #tpu.dot_dimension_numbers<[1], [0], [0], [1], [0, 0, 1, 1], [], []>} : vector<48x32xf32>, vector<32x32xf32>, vector<48x32xf32> -> vector<48x32xf32>
    %172 = arith.addf %106, %171 : vector<48x32xf32>
    %173 = vector.broadcast %111 : vector<1x32xf32> to vector<48x32xf32>
    %174 = arith.addf %172, %173 : vector<48x32xf32>
    %cst_61 = arith.constant dense<0.000000e+00> : vector<48xf32>
    %175 = vector.multi_reduction <add>, %174, %cst_61 [1] : vector<48x32xf32> to vector<48xf32>
    %176 = vector.shape_cast %175 : vector<48xf32> to vector<48x1xf32>
    %cst_62 = arith.constant 3.200000e+01 : f32
    %177 = vector.broadcast %cst_62 : f32 to vector<48x1xf32>
    %178 = arith.divf %176, %177 : vector<48x1xf32>
    %179 = vector.broadcast %178 : vector<48x1xf32> to vector<48x32xf32>
    %180 = arith.subf %174, %179 : vector<48x32xf32>
    %181 = arith.mulf %180, %180 : vector<48x32xf32>
    %cst_63 = arith.constant dense<0.000000e+00> : vector<48xf32>
    %182 = vector.multi_reduction <add>, %181, %cst_63 [1] : vector<48x32xf32> to vector<48xf32>
    %183 = vector.shape_cast %182 : vector<48xf32> to vector<48x1xf32>
    %cst_64 = arith.constant 3.200000e+01 : f32
    %184 = vector.broadcast %cst_64 : f32 to vector<48x1xf32>
    %185 = arith.divf %183, %184 : vector<48x1xf32>
    %cst_65 = arith.constant 9.99999974E-6 : f32
    %186 = vector.broadcast %cst_65 : f32 to vector<48x1xf32>
    %187 = arith.addf %185, %186 : vector<48x1xf32>
    %188 = math.rsqrt %187 : vector<48x1xf32>
    %189 = vector.broadcast %188 : vector<48x1xf32> to vector<48x32xf32>
    %190 = arith.mulf %180, %189 : vector<48x32xf32>
    %191 = vector.broadcast %112 : vector<1x32xf32> to vector<48x32xf32>
    %192 = arith.mulf %190, %191 : vector<48x32xf32>
    %193 = vector.broadcast %113 : vector<1x32xf32> to vector<48x32xf32>
    %194 = arith.addf %192, %193 : vector<48x32xf32>
    %cst_66 = arith.constant dense<0.000000e+00> : vector<48x128xf32>
    %195 = tpu.matmul %194, %117, %cst_66 {dimension_numbers = #tpu.dot_dimension_numbers<[1], [0], [0], [1], [0, 0, 1, 1], [], []>} : vector<48x32xf32>, vector<32x128xf32>, vector<48x128xf32> -> vector<48x128xf32>
    %196 = vector.broadcast %114 : vector<1x128xf32> to vector<48x128xf32>
    %197 = arith.addf %195, %196 : vector<48x128xf32>
    %cst_67 = arith.constant 5.000000e-01 : f32
    %198 = vector.broadcast %cst_67 : f32 to vector<48x128xf32>
    %199 = arith.mulf %198, %197 : vector<48x128xf32>
    %cst_68 = arith.constant 0.707106769 : f32
    %200 = vector.broadcast %cst_68 : f32 to vector<48x128xf32>
    %201 = arith.mulf %197, %200 : vector<48x128xf32>
    %202 = math.erf %201 : vector<48x128xf32>
    %cst_69 = arith.constant 1.000000e+00 : f32
    %203 = vector.broadcast %cst_69 : f32 to vector<48x128xf32>
    %204 = arith.addf %203, %202 : vector<48x128xf32>
    %205 = arith.mulf %199, %204 : vector<48x128xf32>
    %cst_70 = arith.constant dense<0.000000e+00> : vector<48x32xf32>
    %206 = tpu.matmul %205, %118, %cst_70 {dimension_numbers = #tpu.dot_dimension_numbers<[1], [0], [0], [1], [0, 0, 1, 1], [], []>} : vector<48x128xf32>, vector<128x32xf32>, vector<48x32xf32> -> vector<48x32xf32>
    %207 = arith.addf %174, %206 : vector<48x32xf32>
    %208 = vector.broadcast %115 : vector<1x32xf32> to vector<48x32xf32>
    %209 = arith.addf %207, %208 : vector<48x32xf32>
    %c129 = arith.constant 129 : index
    %c0_71 = arith.constant 0 : index
    %210 = vector.load %arg1[%c129, %c0_71] : memref<168x128xf32, #tpu.memory_space<vmem>>, vector<1x32xf32>
    %c130 = arith.constant 130 : index
    %c0_72 = arith.constant 0 : index
    %211 = vector.load %arg1[%c130, %c0_72] : memref<168x128xf32, #tpu.memory_space<vmem>>, vector<1x32xf32>
    %c96 = arith.constant 96 : index
    %c0_73 = arith.constant 0 : index
    %212 = vector.load %arg1[%c96, %c0_73] : memref<168x128xf32, #tpu.memory_space<vmem>>, vector<32x128xf32>
    %c128 = arith.constant 128 : index
    %c0_74 = arith.constant 0 : index
    %213 = vector.load %arg1[%c128, %c0_74] : memref<168x128xf32, #tpu.memory_space<vmem>>, vector<1x128xf32>
    %214 = vector.extract_strided_slice %209 {offsets = [0, 0], sizes = [1, 32], strides = [1, 1]} : vector<48x32xf32> to vector<1x32xf32>
    %215 = vector.extract_strided_slice %209 {offsets = [24, 0], sizes = [1, 32], strides = [1, 1]} : vector<48x32xf32> to vector<1x32xf32>
    %216 = tpu.concatenate %214, %215 in 0 : vector<1x32xf32>, vector<1x32xf32> -> vector<2x32xf32>
    %cst_75 = arith.constant dense<0.000000e+00> : vector<2xf32>
    %217 = vector.multi_reduction <add>, %216, %cst_75 [1] : vector<2x32xf32> to vector<2xf32>
    %218 = vector.shape_cast %217 : vector<2xf32> to vector<2x1xf32>
    %cst_76 = arith.constant 3.200000e+01 : f32
    %219 = vector.broadcast %cst_76 : f32 to vector<2x1xf32>
    %220 = arith.divf %218, %219 : vector<2x1xf32>
    %221 = vector.broadcast %220 : vector<2x1xf32> to vector<2x32xf32>
    %222 = arith.subf %216, %221 : vector<2x32xf32>
    %223 = arith.mulf %222, %222 : vector<2x32xf32>
    %cst_77 = arith.constant dense<0.000000e+00> : vector<2xf32>
    %224 = vector.multi_reduction <add>, %223, %cst_77 [1] : vector<2x32xf32> to vector<2xf32>
    %225 = vector.shape_cast %224 : vector<2xf32> to vector<2x1xf32>
    %cst_78 = arith.constant 3.200000e+01 : f32
    %226 = vector.broadcast %cst_78 : f32 to vector<2x1xf32>
    %227 = arith.divf %225, %226 : vector<2x1xf32>
    %cst_79 = arith.constant 9.99999974E-6 : f32
    %228 = vector.broadcast %cst_79 : f32 to vector<2x1xf32>
    %229 = arith.addf %227, %228 : vector<2x1xf32>
    %230 = math.rsqrt %229 : vector<2x1xf32>
    %231 = vector.broadcast %230 : vector<2x1xf32> to vector<2x32xf32>
    %232 = arith.mulf %222, %231 : vector<2x32xf32>
    %233 = vector.broadcast %210 : vector<1x32xf32> to vector<2x32xf32>
    %234 = arith.mulf %232, %233 : vector<2x32xf32>
    %235 = vector.broadcast %211 : vector<1x32xf32> to vector<2x32xf32>
    %236 = arith.addf %234, %235 : vector<2x32xf32>
    %cst_80 = arith.constant dense<0.000000e+00> : vector<2x128xf32>
    %237 = tpu.matmul %236, %212, %cst_80 {dimension_numbers = #tpu.dot_dimension_numbers<[1], [0], [0], [1], [0, 0, 1, 1], [], []>} : vector<2x32xf32>, vector<32x128xf32>, vector<2x128xf32> -> vector<2x128xf32>
    %238 = vector.broadcast %213 : vector<1x128xf32> to vector<2x128xf32>
    %239 = arith.addf %237, %238 : vector<2x128xf32>
    %c0_81 = arith.constant 0 : index
    %c0_82 = arith.constant 0 : index
    %240 = vector.load %arg3[%c0_81, %c0_82] : memref<2x128xf32, #tpu.memory_space<vmem>>, vector<2x128xf32>
    tpu.vector_store %arg3[%c0_81, %c0_82], %239 {strides = array<i32>} : memref<2x128xf32, #tpu.memory_space<vmem>>, vector<2x128xf32>,
    return
  }
}

</mosaic_0001>

<bundles_post_ra>
// kernel: vit_forward.1
= control target key start
LH: loop header
LB: loop body
LE: loop exit
PB: predicated region body
PF: predicated region fallthrough
CT: control target
= control target key end

     0   :  { %vm37_vm0 = vcmask 736256   ;;  %s4131_s0 = inlined_call_operand.vmem [shape: f32[48,90], index: 0, kind: input, shape index: {}]   ;;  %s4132_s1 = inlined_call_operand.vmem [shape: f32[168,128], index: 1, kind: input, shape index: {}]   ;;  %s4133_s2 = inlined_call_operand.vmem [shape: f32[464,128], index: 2, kind: input, shape index: {}]   ;;  %s4134_s3 = inlined_call_operand.hbm [shape: f32[2,128], index: 3, kind: output, shape index: {}]  }
   0x1   :  { %v15_v0 = vld [vmem:[%s4132_s1] sm:$0xff]  ;;  %v16_v1 = vld [vmem:[%s4132_s1 + $0x8] sm:$0xff]  ;;  %v17_v2 = vld [vmem:[%s4132_s1 + $0x10] sm:$0xff] }
   0x2   :  { %v3047_v3 = vpack.c.bf16 %v16_v1, %v15_v0  ;;  %v18_v4 = vld [vmem:[%s4132_s1 + $0x18] sm:$0xff]  ;;  %v19_v6 = vld [vmem:[%s4132_s1 + $0x20] sm:$0xff]  ;;  %v20_v7 = vld [vmem:[%s4132_s1 + $0x28] sm:$0xff] }
   0x3   :  { %v3051_v5 = vpack.c.bf16 %v18_v4, %v17_v2  ;;  %v31_v8 = vld [vmem:[%s4131_s0] sm:$0xff]  ;;  %v3055_v9 = vpack.c.bf16 %v20_v7, %v19_v6  ;;  %v21_v10 = vld [vmem:[%s4132_s1 + $0x30] sm:$0xff]  ;;  %v22_v11 = vld [vmem:[%s4132_s1 + $0x38] sm:$0xff] }
   0x4   :  { %3048 = vmatprep.subr.bf16.mxu0 %v3047_v3  ;;  %2775 = vmatprep.mubr.msk.f32.mxu0 %vm37_vm0, %v31_v8 }
   0x5   :  { %3050 = vmatpush3.bf16.msra.mxu0 %v3047_v3 }
   0x6   :  { %3052 = vmatprep.subr.bf16.mxu0 %v3051_v5 }
   0x7   :  { %8 = vsyncpa [#allocation3], 0  ;;  %v3059_v12 = vpack.c.bf16 %v22_v11, %v21_v10  ;;  %v23_v13 = vld [vmem:[%s4132_s1 + $0x40] sm:$0xff]  ;;  %v24_v14 = vld [vmem:[%s4132_s1 + $0x48] sm:$0xff]  ;;  %vm56_vm1 = vcmask 1041408   ;;  %vm3400_vm2 = vmmov 1  }
   0x8   :  { %v3063_v15 = vpack.c.bf16 %v24_v14, %v23_v13  ;;  %v25_v16 = vld [vmem:[%s4132_s1 + $0x50] sm:$0xff]  ;;  %v26_v17 = vld [vmem:[%s4132_s1 + $0x58] sm:$0x3]  ;;  %vm3068_vm3 = vmpackc.low %vm56_vm1, %vm3400_vm2  ;;  %vm191_vm4 = vcmask 261120   ;;  %s3401_s15 = smov 96   ;;  %s3402_s16 = smov 64  }
   0x9   :  { %3054 = vmatpush3.bf16.msra.mxu0 %v3051_v5  ;;  %v3067_v18 = vpack.c.bf16 %v26_v17, %v25_v16  ;;  %v32_v19 = vld [vmem:[%s4131_s0 + $0x8] sm:$0xff]  ;;  %v33_v20 = vld [vmem:[%s4131_s0 + $0x10] sm:$0xff]  ;;  %v34_v21 = vld [vmem:[%s4131_s0 + $0x18] sm:$0xff]  ;;  %vm2379_vm5 = vcmask 1040384   ;;  %vm2381_vm6 = vcmask 254976   ;;  %vm3404_vm7 = vmmov 0  }
   0xa   :  { %3056 = vmatprep.subr.bf16.mxu0 %v3055_v9  ;;  %v35_v22 = vld [vmem:[%s4131_s0 + $0x20] sm:$0xff]  ;;  %v36_v23 = vld [vmem:[%s4131_s0 + $0x28] sm:$0xff]  ;;  %v157_v5 = vld [vmem:[%s4133_s2 + $0x10] sm:$0xff]  ;;  %s3406_s23 = smov [#allocation2]  }
   0xb   :  { %v155_v2 = vld [vmem:[%s4133_s2] sm:$0xff]  ;;  %v156_v3 = vld [vmem:[%s4133_s2 + $0x8] sm:$0xff]  ;;  %v158_v6 = vld [vmem:[%s4133_s2 + $0x18] sm:$0xff]  ;;  %s2489_s24 = sshll.u32 %s3406_s23, 4  ;;  %s2490_s24 = int_to_ptr.vmem [resolvable:$true] %s2489_s24 }
   0xc   :  { %v3073_v4 = vpack.c.bf16 %v156_v3, %v155_v2  ;;  %v3077_v7 = vpack.c.bf16 %v158_v6, %v157_v5  ;;  %s3376_s25 = scalar_lea.vmem %s2490_s24, 32  ;;  %p3381_p1 = scmp.lt.s32.totalorder %s2490_s24, %s2490_s24 }
   0xd   :  { %3058 = vmatpush3.bf16.msra.mxu0 %v3055_v9  ;;  %p3377_p0 = scmp.ne.s32.totalorder %s2490_s24, %s3376_s25  ;;  %p3382_p2 = scmp.lt.s32.totalorder %s3376_s25, %s3376_s25 }
   0xe   :  { %3060 = vmatprep.subr.bf16.mxu0 %v3059_v12 }
   0xf   :  { %p3383_p3 = por %p3382_p2, %p3381_p1 }
  0x11   :  { %3062 = vmatpush3.bf16.msra.mxu0 %v3059_v12  ;;  %p3384_p4 = pnand %p3383_p3, %p3377_p0 }
  0x12   :  { %3064 = vmatprep.subr.bf16.mxu0 %v3063_v15 }
  0x15   :  { %3066 = vmatpush3.bf16.msra.mxu0 %v3063_v15 }
  0x16   :  { %3069 = vmatprep.subr.msk.bf16.mxu0 %vm3068_vm3, %v3067_v18 }
  0x19   :  { %3072 = vmatpush3.bf16.msk.msra.mxu0 %vm3068_vm3, %v3067_v18 }
  0x1a   :  { %3074 = vmatprep.subr.bf16.mxu0 %v3073_v4 }
  0x1c   :  { %2776 = vmatmul.mubr.msk.f32.vlgmr.msra.gmra.mrb[0].mxu0 %vm37_vm0, %v32_v19 }
  0x1d   :  { %2778 = vmatprep.mubr.msk.f32.mxu0 %vm37_vm0, %v33_v20  ;;  %3076 = vmatpush3.bf16.msra.mxu0 %v3073_v4 }
  0x1e   :  { %3078 = vmatprep.subr.bf16.mxu0 %v3077_v7 }
  0x20   :  { %2779 = vmatmul.mubr.msk.f32.gmra.mrb[2].mxu0 %vm37_vm0, %v34_v21 }
  0x21   :  { %2781 = vmatprep.mubr.msk.f32.mxu0 %vm37_vm0, %v35_v22  ;;  %3080 = vmatpush3.bf16.msra.mxu0 %v3077_v7 }
  0x24   :  { %2782 = vmatmul.mubr.msk.f32.gmra.mrb[4].mxu0 %vm37_vm0, %v36_v23 }
  0xef   :  { %v3487_v24 = vpop.f32.mrb[0].mxu0 }
  0xf0   :  { %v3489_v25 = vpop.f32.mrb[1].mxu0  ;;  %v195_v29 = vsel %vm191_vm4, %v3487_v24, 0.0 }
  0xf1   :  { %v192_v26 = vsel %vm191_vm4, %v3489_v25, 0.0 }
  0xf2   :  { %193 = vadd.xlane.f32.xlu0 %v192_v26 }
  0xf3   :  { %v3493_v27 = vpop.f32.mrb[2].mxu0 }
  0xf4   :  { %v3495_v28 = vpop.f32.mrb[3].mxu0  ;;  %v201_v33 = vsel %vm191_vm4, %v3493_v27, 0.0 }
  0xf5   :  { %v198_v30 = vsel %vm191_vm4, %v3495_v28, 0.0 }
  0xf6   :  { %196 = vadd.xlane.f32.xlu0 %v195_v29  ;;  %199 = vadd.xlane.f32.xlu1 %v198_v30  ;;  %v2504_v30 = vld [vmem:[%s4133_s2 + $0x21] ss:$0 sm:$0xff] }
  0xf7   :  { %v3501_v31 = vpop.f32.mrb[4].mxu0 }
  0xf8   :  { %v3503_v32 = vpop.f32.mrb[5].mxu0  ;;  %v207_v35 = vsel %vm191_vm4, %v3501_v31, 0.0 }
  0xf9   :  { %v204_v34 = vsel %vm191_vm4, %v3503_v32, 0.0 }
  0xfa   :  { %202 = vadd.xlane.f32.xlu1 %v201_v33  ;;  %205 = vadd.xlane.f32.xlu0 %v204_v34 }
  0xfe   :  { %208 = vadd.xlane.f32.xlu1 %v207_v35  ;;  %v2505_v35 = vld [vmem:[%s4133_s2 + $0x22] ss:$0 sm:$0xff] }
 0x17f   :  { %v194_v36 = vpop.xlane.xlu0 %193 }
 0x180   :  { %v211_v37 = vmul.f32 0.03125, %v194_v36 }
 0x182   :  { %v3512_v38 = vsub.f32 %v3489_v25, %v211_v37 }
 0x183   :  { %v197_v39 = vpop.xlane.xlu0 %196  ;;  %v200_v40 = vpop.xlane.xlu1 %199 }
 0x184   :  { %v212_v41 = vmul.f32 0.03125, %v197_v39  ;;  %v213_v42 = vmul.f32 0.03125, %v200_v40  ;;  %v223_v43 = vmul.f32 %v3512_v38, %v3512_v38 }
 0x186   :  { %v3517_v44 = vsub.f32 %v3487_v24, %v212_v41  ;;  %v3520_v45 = vsub.f32 %v3495_v28, %v213_v42  ;;  %v229_v46 = vsel %vm191_vm4, %v223_v43, 0.0 }
 0x187   :  { %v203_v47 = vpop.xlane.xlu1 %202  ;;  %230 = vadd.xlane.f32.xlu0 %v229_v46  ;;  %v206_v48 = vpop.xlane.xlu0 %205 }
 0x188   :  { %v214_v49 = vmul.f32 0.03125, %v203_v47  ;;  %v215_v50 = vmul.f32 0.03125, %v206_v48  ;;  %v224_v51 = vmul.f32 %v3517_v44, %v3517_v44  ;;  %v225_v52 = vmul.f32 %v3520_v45, %v3520_v45 }
 0x18a   :  { %v3528_v53 = vsub.f32 %v3493_v27, %v214_v49  ;;  %v3531_v54 = vsub.f32 %v3503_v32, %v215_v50  ;;  %v232_v55 = vsel %vm191_vm4, %v224_v51, 0.0  ;;  %v235_v56 = vsel %vm191_vm4, %v225_v52, 0.0 }
 0x18b   :  { %233 = vadd.xlane.f32.xlu1 %v232_v55  ;;  %v209_v57 = vpop.xlane.xlu1 %208  ;;  %236 = vadd.xlane.f32.xlu0 %v235_v56 }
 0x18c   :  { %v216_v58 = vmul.f32 0.03125, %v209_v57  ;;  %v226_v59 = vmul.f32 %v3528_v53, %v3528_v53  ;;  %v227_v60 = vmul.f32 %v3531_v54, %v3531_v54 }
 0x18e   :  { %v3540_v61 = vsub.f32 %v3501_v31, %v216_v58  ;;  %v238_v62 = vsel %vm191_vm4, %v226_v59, 0.0  ;;  %v241_v63 = vsel %vm191_vm4, %v227_v60, 0.0  ;;  %v28_v59 = vld [vmem:[%s4132_s1 + $0x90] sm:$0xff] }
 0x18f   :  { %239 = vadd.xlane.f32.xlu1 %v238_v62  ;;  %242 = vadd.xlane.f32.xlu0 %v241_v63  ;;  %v30_v62 = vld [vmem:[%s4132_s1 + $0xa0] sm:$0xff] }
 0x190   :  { %v228_v0 = vmul.f32 %v3540_v61, %v3540_v61 }
 0x192   :  { %v244_v1 = vsel %vm191_vm4, %v228_v0, 0.0  ;;  %v2506_v0 = vld [vmem:[%s4133_s2 + $0x20] ss:$0 sm:$0xff] }
 0x193   :  { %245 = vadd.xlane.f32.xlu1 %v244_v1 }
 0x214   :  { %v231_v8 = vpop.xlane.xlu0 %230 }
 0x215   :  { %v247_v9 = vmul.f32 0.03125, %v231_v8 }
 0x217   :  { %v253_v10 = vadd.f32 1e-05, %v247_v9 }
 0x218   :  { %v234_v11 = vpop.xlane.xlu1 %233  ;;  %v237_v12 = vpop.xlane.xlu0 %236 }
 0x219   :  { %3230 = vrsqrt.f32 %v253_v10  ;;  %v248_v13 = vmul.f32 0.03125, %v234_v11  ;;  %v249_v14 = vmul.f32 0.03125, %v237_v12 }
 0x21b   :  { %v254_v15 = vadd.f32 1e-05, %v248_v13  ;;  %v255_v16 = vadd.f32 1e-05, %v249_v14 }
 0x21c   :  { %v240_v17 = vpop.xlane.xlu1 %239  ;;  %v243_v18 = vpop.xlane.xlu0 %242 }
 0x21d   :  { %3232 = vrsqrt.f32 %v254_v15  ;;  %v250_v19 = vmul.f32 0.03125, %v240_v17  ;;  %v251_v20 = vmul.f32 0.03125, %v243_v18 }
 0x21e   :  { %3234 = vrsqrt.f32 %v255_v16 }
 0x21f   :  { %v256_v21 = vadd.f32 1e-05, %v250_v19  ;;  %v257_v22 = vadd.f32 1e-05, %v251_v20 }
 0x220   :  { %v246_v23 = vpop.xlane.xlu1 %245 }
 0x221   :  { %3236 = vrsqrt.f32 %v256_v21  ;;  %v252_v26 = vmul.f32 0.03125, %v246_v23 }
 0x222   :  { %3238 = vrsqrt.f32 %v257_v22 }
 0x223   :  { %v3231_v29 = vpop.eup %3230  ;;  %v258_v33 = vadd.f32 1e-05, %v252_v26 }
 0x224   :  { %v265_v34 = vmul.f32 %v3231_v29, %v3512_v38 }
 0x225   :  { %3240 = vrsqrt.f32 %v258_v33 }
 0x226   :  { %v275_v36 = vmul.f32 %v2504_v30, %v265_v34 }
 0x227   :  { %v3233_v37 = vpop.eup %3232 }
 0x228   :  { %v3235_v39 = vpop.eup %3234  ;;  %v266_v40 = vmul.f32 %v3233_v37, %v3517_v44  ;;  %v285_v41 = vadd.f32 %v2505_v35, %v275_v36  ;;  %v167_v37 = vld [vmem:[%s4133_s2 + $0x28] sm:$0xff] }
 0x229   :  { %v267_v42 = vmul.f32 %v3235_v39, %v3520_v45  ;;  %v168_v39 = vld [vmem:[%s4133_s2 + $0x30] sm:$0xff] }
 0x22a   :  { %v276_v43 = vmul.f32 %v2504_v30, %v266_v40  ;;  %2792 = vmatprep.mubr.msk.f32.mxu0 %vm191_vm4, %v285_v41  ;;  %v3097_v40 = vpack.c.bf16 %v168_v39, %v167_v37  ;;  %v169_v41 = vld [vmem:[%s4133_s2 + $0x38] sm:$0xff] }
 0x22b   :  { %v3237_v46 = vpop.eup %3236  ;;  %v277_v47 = vmul.f32 %v2504_v30, %v267_v42  ;;  %v170_v42 = vld [vmem:[%s4133_s2 + $0x40] sm:$0xff] }
 0x22c   :  { %v3239_v48 = vpop.eup %3238  ;;  %v286_v38 = vadd.f32 %v2505_v35, %v276_v43  ;;  %v268_v49 = vmul.f32 %v3237_v46, %v3528_v53  ;;  %3098 = vmatprep.subr.bf16.mxu0 %v3097_v40  ;;  %v3101_v43 = vpack.c.bf16 %v170_v42, %v169_v41 }
 0x22d   :  { %v287_v50 = vadd.f32 %v2505_v35, %v277_v47  ;;  %v269_v51 = vmul.f32 %v3239_v48, %v3531_v54  ;;  %v27_v54 = vld [vmem:[%s4132_s1 + $0x88] sm:$0xff] }
 0x22e   :  { %2793 = vmatmul.mubr.msk.f32.vlgmr.msra.gmra.mrb[6].mxu0 %vm191_vm4, %v286_v38  ;;  %v278_v52 = vmul.f32 %v2504_v30, %v268_v49  ;;  %v3583_v60 = vpack.c.bf16 %v28_v59, %v27_v54 }
 0x22f   :  { %v3241_v55 = vpop.eup %3240  ;;  %2795 = vmatprep.mubr.msk.f32.mxu0 %vm191_vm4, %v287_v50  ;;  %v279_v44 = vmul.f32 %v2504_v30, %v269_v51  ;;  %3100 = vmatpush3.bf16.msra.mxu0 %v3097_v40 }
 0x230   :  { %v288_v45 = vadd.f32 %v2505_v35, %v278_v52  ;;  %v270_v56 = vmul.f32 %v3241_v55, %v3540_v61  ;;  %3082 = vmatprep.subr.bf16.mxu1 %v3583_v60  ;;  %v29_v61 = vld [vmem:[%s4132_s1 + $0x98] sm:$0xff]  ;;  %3102 = vmatprep.subr.bf16.mxu0 %v3101_v43 }
 0x231   :  { %v289_v57 = vadd.f32 %v2505_v35, %v279_v44  ;;  %3084 = vmatpush3.bf16.msra.mxu1 %v3583_v60  ;;  %v3593_v63 = vpack.c.bf16 %v30_v62, %v29_v61 }
 0x232   :  { %2796 = vmatmul.mubr.msk.f32.gmra.mrb[8].mxu0 %vm191_vm4, %v288_v45  ;;  %v280_v58 = vmul.f32 %v2504_v30, %v270_v56 }
 0x233   :  { %2798 = vmatprep.mubr.msk.f32.mxu0 %vm191_vm4, %v289_v57  ;;  %3086 = vmatprep.subr.bf16.mxu1 %v3593_v63 }
 0x234   :  { %v290_v53 = vadd.f32 %v2505_v35, %v280_v58  ;;  %3104 = vmatpush3.bf16.msra.mxu0 %v3101_v43 }
 0x235   :  { %3088 = vmatpush3.bf16.msra.mxu1 %v3593_v63 }
 0x236   :  { %2799 = vmatmul.mubr.msk.f32.gmra.mrb[10].mxu0 %vm191_vm4, %v290_v53  ;;  %3090 = vmatprep.subr.bf16.mxu1 %v3583_v60 }
 0x301   :  { %v2794_v1 = vpop.f32.mrb[6].mxu0 }
 0x302   :  { %v385_v2 = vadd.f32 %v2794_v1, %v2506_v0  ;;  %v379_v3 = vpop.f32.mrb[7].mxu0 }
 0x303   :  { %v380_v4 = vadd.f32 %v2506_v0, %v379_v3 }
 0x304   :  { %416 = vrot.lane.b32.xlu1 %v385_v2, %s3401_s15 }
 0x305   :  { %414 = vrot.lane.b32.xlu0 %v380_v4, %s3401_s15  ;;  %v2797_v5 = vpop.f32.mrb[8].mxu0 }
 0x306   :  { %v389_v6 = vpop.f32.mrb[9].mxu0  ;;  %v395_v10 = vadd.f32 %v2797_v5, %v2506_v0 }
 0x307   :  { %v390_v7 = vadd.f32 %v2506_v0, %v389_v6 }
 0x309   :  { %418 = vrot.lane.b32.xlu1 %v390_v7, %s3401_s15  ;;  %v2800_v8 = vpop.f32.mrb[10].mxu0 }
 0x30a   :  { %v399_v9 = vpop.f32.mrb[11].mxu0  ;;  %v405_v12 = vadd.f32 %v2800_v8, %v2506_v0 }
 0x30b   :  { %v400_v11 = vadd.f32 %v2506_v0, %v399_v9 }
 0x30d   :  { %420 = vrot.lane.b32.xlu1 %v395_v10, %s3401_s15  ;;  %422 = vrot.lane.b32.xlu0 %v400_v11, %s3401_s15 }
 0x311   :  { %424 = vrot.lane.b32.xlu1 %v405_v12, %s3401_s15  ;;  %742 = vrot.lane.b32.xlu0 %v380_v4, %s3402_s16 }
 0x315   :  { %748 = vrot.lane.b32.xlu1 %v395_v10, %s3402_s16  ;;  %744 = vrot.lane.b32.xlu0 %v385_v2, %s3402_s16 }
 0x319   :  { %750 = vrot.lane.b32.xlu1 %v400_v11, %s3402_s16  ;;  %746 = vrot.lane.b32.xlu0 %v390_v7, %s3402_s16 }
 0x31d   :  { %752 = vrot.lane.b32.xlu1 %v405_v12, %s3402_s16 }
 0x376   :  { %v417_v13 = vpop.permute.xlu1 %416 }
 0x377   :  { %v415_v14 = vpop.permute.xlu0 %414  ;;  %v433_v16 = vmul.f32 %v417_v13, %v385_v2  ;;  %v561_v35 = vmul.f32 %v417_v13, %v400_v11 }
 0x378   :  { %v432_v15 = vmul.f32 %v415_v14, %v380_v4  ;;  %v560_v34 = vmul.f32 %v415_v14, %v395_v10 }
 0x37a   :  { %2809 = vmatprep.mubr.msk.f32.mxu1 %vm191_vm4, %v432_v15 }
 0x37b   :  { %v419_v17 = vpop.permute.xlu1 %418  ;;  %2810 = vmatmul.mubr.msk.f32.vlgmr.msra.gmra.mrb[0].mxu1 %vm191_vm4, %v433_v16 }
 0x37c   :  { %v434_v18 = vmul.f32 %v419_v17, %v390_v7  ;;  %3092 = vmatpush3.bf16.msra.mxu1 %v3583_v60  ;;  %v562_v36 = vmul.f32 %v419_v17, %v405_v12 }
 0x37d   :  { %3094 = vmatprep.subr.bf16.mxu1 %v3593_v63 }
 0x37e   :  { %2812 = vmatprep.mubr.msk.f32.mxu1 %vm191_vm4, %v434_v18 }
 0x37f   :  { %v421_v19 = vpop.permute.xlu1 %420  ;;  %v423_v20 = vpop.permute.xlu0 %422 }
 0x380   :  { %v435_v21 = vmul.f32 %v421_v19, %v395_v10  ;;  %v436_v22 = vmul.f32 %v423_v20, %v400_v11  ;;  %3096 = vmatpush3.bf16.msra.mxu1 %v3593_v63  ;;  %v557_v29 = vmul.f32 %v421_v19, %v380_v4  ;;  %v558_v30 = vmul.f32 %v423_v20, %v385_v2 }
 0x382   :  { %2813 = vmatmul.mubr.msk.f32.gmra.mrb[2].mxu1 %vm191_vm4, %v435_v21 }
 0x383   :  { %v425_v23 = vpop.permute.xlu1 %424  ;;  %2815 = vmatprep.mubr.msk.f32.mxu1 %vm191_vm4, %v436_v22 }
 0x384   :  { %v437_v26 = vmul.f32 %v425_v23, %v405_v12  ;;  %v559_v33 = vmul.f32 %v425_v23, %v390_v7 }
 0x386   :  { %2816 = vmatmul.mubr.msk.f32.gmra.mrb[4].mxu1 %vm191_vm4, %v437_v26 }
 0x387   :  { %2826 = vmatprep.mubr.msk.f32.mxu1 %vm191_vm4, %v557_v29 }
 0x38a   :  { %2827 = vmatmul.mubr.msk.f32.vlgmr.msra.gmra.mrb[6].mxu1 %vm191_vm4, %v558_v30 }
 0x38b   :  { %2829 = vmatprep.mubr.msk.f32.mxu1 %vm191_vm4, %v559_v33 }
 0x38e   :  { %2830 = vmatmul.mubr.msk.f32.gmra.mrb[8].mxu1 %vm191_vm4, %v560_v34 }
 0x38f   :  { %2832 = vmatprep.mubr.msk.f32.mxu1 %vm191_vm4, %v561_v35 }
 0x392   :  { %2833 = vmatmul.mubr.msk.f32.gmra.mrb[10].mxu1 %vm191_vm4, %v562_v36 }
 0x44e   :  { %v2811_v46 = vpop.f32.mrb[0].mxu1 }
 0x44f   :  { %v522_v47 = vpop.f32.mrb[1].mxu1  ;;  %v552_v52 = vmul.f32 0.35355338, %v2811_v46 }
 0x450   :  { %v551_v45 = vmul.f32 0.35355338, %v522_v47 }
 0x455   :  { %v2814_v48 = vpop.f32.mrb[2].mxu1 }
 0x456   :  { %v532_v38 = vpop.f32.mrb[3].mxu1  ;;  %v554_v58 = vmul.f32 0.35355338, %v2814_v48 }
 0x457   :  { %v553_v59 = vmul.f32 0.35355338, %v532_v38 }
 0x459   :  { %v2817_v49 = vpop.f32.mrb[4].mxu1 }
 0x45a   :  { %v542_v50 = vpop.f32.mrb[5].mxu1  ;;  %v556_v2 = vmul.f32 0.35355338, %v2817_v49 }
 0x45b   :  { %v555_v6 = vmul.f32 0.35355338, %v542_v50 }
 0x45d   :  { %v2828_v51 = vpop.f32.mrb[6].mxu1 }
 0x45e   :  { %v677_v55 = vmul.f32 0.35355338, %v2828_v51  ;;  %v647_v44 = vpop.f32.mrb[7].mxu1 }
 0x45f   :  { %v676_v56 = vmul.f32 0.35355338, %v647_v44 }
 0x460   :  { %v683_v57 = vmax.f32 %v552_v52, %v677_v55 }
 0x461   :  { %v682_v53 = vmax.f32 %v551_v45, %v676_v56  ;;  %v2831_v54 = vpop.f32.mrb[8].mxu1 }
 0x462   :  { %v689_v61 = vsub.f32 %v552_v52, %v683_v57  ;;  %v707_v62 = vsub.f32 %v677_v55, %v683_v57  ;;  %v679_v0 = vmul.f32 0.35355338, %v2831_v54  ;;  %v657_v1 = vpop.f32.mrb[9].mxu1 }
 0x463   :  { %v688_v3 = vsub.f32 %v551_v45, %v682_v53  ;;  %v706_v4 = vsub.f32 %v676_v56, %v682_v53  ;;  %v678_v5 = vmul.f32 0.35355338, %v657_v1  ;;  %v749_v53 = vpop.permute.xlu1 %748 }
 0x464   :  { %v696_v7 = vmul.f32 1.442695, %v689_v61  ;;  %v714_v8 = vmul.f32 1.442695, %v707_v62  ;;  %v685_v9 = vmax.f32 %v554_v58, %v679_v0 }
 0x465   :  { %v694_v10 = vmul.f32 1.442695, %v688_v3  ;;  %v712_v11 = vmul.f32 1.442695, %v706_v4  ;;  %v684_v12 = vmax.f32 %v553_v59, %v678_v5  ;;  %v2834_v13 = vpop.f32.mrb[10].mxu1 }
 0x466   :  { %3242 = vpow2.f32 %v696_v7  ;;  %v691_v14 = vsub.f32 %v554_v58, %v685_v9  ;;  %v709_v15 = vsub.f32 %v679_v0, %v685_v9  ;;  %v681_v16 = vmul.f32 0.35355338, %v2834_v13  ;;  %v667_v17 = vpop.f32.mrb[11].mxu1  ;;  %v743_v58 = vpop.permute.xlu0 %742 }
 0x467   :  { %3244 = vpow2.f32 %v714_v8  ;;  %v690_v18 = vsub.f32 %v553_v59, %v684_v12  ;;  %v708_v19 = vsub.f32 %v678_v5, %v684_v12  ;;  %v680_v20 = vmul.f32 0.35355338, %v667_v17  ;;  %v751_v4 = vpop.permute.xlu1 %750 }
 0x468   :  { %3246 = vpow2.f32 %v694_v10  ;;  %v700_v21 = vmul.f32 1.442695, %v691_v14  ;;  %v718_v22 = vmul.f32 1.442695, %v709_v15  ;;  %v687_v23 = vmax.f32 %v556_v2, %v681_v16 }
 0x469   :  { %3248 = vpow2.f32 %v712_v11  ;;  %v698_v26 = vmul.f32 1.442695, %v690_v18  ;;  %v716_v29 = vmul.f32 1.442695, %v708_v19  ;;  %v686_v30 = vmax.f32 %v555_v6, %v680_v20 }
 0x46a   :  { %3250 = vpow2.f32 %v700_v21  ;;  %v693_v33 = vsub.f32 %v556_v2, %v687_v23  ;;  %v711_v34 = vsub.f32 %v681_v16, %v687_v23  ;;  %v745_v3 = vpop.permute.xlu0 %744 }
 0x46b   :  { %3252 = vpow2.f32 %v718_v22  ;;  %v692_v35 = vsub.f32 %v555_v6, %v686_v30  ;;  %v710_v36 = vsub.f32 %v680_v20, %v686_v30  ;;  %v753_v22 = vpop.permute.xlu1 %752 }
 0x46c   :  { %3254 = vpow2.f32 %v698_v26  ;;  %v704_v37 = vmul.f32 1.442695, %v693_v33  ;;  %v722_v39 = vmul.f32 1.442695, %v711_v34 }
 0x46d   :  { %3256 = vpow2.f32 %v716_v29  ;;  %v702_v40 = vmul.f32 1.442695, %v692_v35  ;;  %v720_v41 = vmul.f32 1.442695, %v710_v36 }
 0x46e   :  { %3258 = vpow2.f32 %v704_v37  ;;  %v747_v21 = vpop.permute.xlu0 %746 }
 0x46f   :  { %3260 = vpow2.f32 %v722_v39 }
 0x470   :  { %v3243_v42 = vpop.eup %3242  ;;  %3262 = vpow2.f32 %v702_v40 }
 0x471   :  { %v3245_v43 = vpop.eup %3244  ;;  %3264 = vpow2.f32 %v720_v41 }
 0x472   :  { %v3247_v46 = vpop.eup %3246  ;;  %v725_v47 = vadd.f32 %v3245_v43, %v3243_v42 }
 0x473   :  { %v3249_v48 = vpop.eup %3248 }
 0x474   :  { %v3251_v38 = vpop.eup %3250  ;;  %3266 = vrcp.f32 %v725_v47  ;;  %v724_v49 = vadd.f32 %v3249_v48, %v3247_v46 }
 0x475   :  { %v3253_v50 = vpop.eup %3252 }
 0x476   :  { %v3255_v51 = vpop.eup %3254  ;;  %3268 = vrcp.f32 %v724_v49  ;;  %v727_v52 = vadd.f32 %v3253_v50, %v3251_v38 }
 0x477   :  { %v3257_v55 = vpop.eup %3256 }
 0x478   :  { %v3259_v44 = vpop.eup %3258  ;;  %3270 = vrcp.f32 %v727_v52  ;;  %v726_v45 = vadd.f32 %v3257_v55, %v3255_v51 }
 0x479   :  { %v3261_v56 = vpop.eup %3260 }
 0x47a   :  { %v3263_v57 = vpop.eup %3262  ;;  %3272 = vrcp.f32 %v726_v45  ;;  %v729_v54 = vadd.f32 %v3261_v56, %v3259_v44 }
 0x47b   :  { %v3265_v59 = vpop.eup %3264 }
 0x47c   :  { %3274 = vrcp.f32 %v729_v54  ;;  %v728_v61 = vadd.f32 %v3265_v59, %v3263_v57 }
 0x47e   :  { %v3267_v62 = vpop.eup %3266  ;;  %3276 = vrcp.f32 %v728_v61 }
 0x47f   :  { %v737_v0 = vmul.f32 %v3267_v62, %v3243_v42  ;;  %v767_v1 = vmul.f32 %v3267_v62, %v3245_v43 }
 0x480   :  { %v3269_v2 = vpop.eup %3268 }
 0x481   :  { %v761_v5 = vmul.f32 %v745_v3, %v737_v0  ;;  %v773_v6 = vmul.f32 %v767_v1, %v751_v4  ;;  %v736_v7 = vmul.f32 %v3269_v2, %v3247_v46  ;;  %v766_v8 = vmul.f32 %v3269_v2, %v3249_v48  ;;  %v2531_v48 = vld [vmem:[%s4133_s2 + $0x23] ss:$0 sm:$0xff] }
 0x482   :  { %v3271_v9 = vpop.eup %3270 }
 0x483   :  { %v760_v10 = vmul.f32 %v743_v58, %v736_v7  ;;  %v772_v11 = vmul.f32 %v766_v8, %v749_v53  ;;  %v779_v12 = vadd.f32 %v773_v6, %v761_v5  ;;  %v739_v13 = vmul.f32 %v3271_v9, %v3251_v38 }
 0x484   :  { %v3273_v14 = vpop.eup %3272  ;;  %v769_v15 = vmul.f32 %v3271_v9, %v3253_v50 }
 0x485   :  { %v778_v16 = vadd.f32 %v772_v11, %v760_v10  ;;  %v738_v17 = vmul.f32 %v3273_v14, %v3255_v51  ;;  %v768_v18 = vmul.f32 %v3273_v14, %v3257_v55  ;;  %v763_v19 = vmul.f32 %v749_v53, %v739_v13 }
 0x486   :  { %v3275_v20 = vpop.eup %3274  ;;  %v775_v23 = vmul.f32 %v769_v15, %v743_v58 }
 0x487   :  { %2843 = vmatprep.mubr.msk.f32.mxu0 %vm191_vm4, %v778_v16  ;;  %v762_v26 = vmul.f32 %v747_v21, %v738_v17  ;;  %v774_v29 = vmul.f32 %v768_v18, %v753_v22  ;;  %v741_v30 = vmul.f32 %v3275_v20, %v3259_v44  ;;  %v771_v33 = vmul.f32 %v3275_v20, %v3261_v56 }
 0x488   :  { %v3277_v34 = vpop.eup %3276  ;;  %2844 = vmatmul.mubr.msk.f32.vlgmr.msra.gmra.mrb[12].mxu0 %vm191_vm4, %v779_v12  ;;  %v781_v35 = vadd.f32 %v775_v23, %v763_v19 }
 0x489   :  { %v780_v36 = vadd.f32 %v774_v29, %v762_v26  ;;  %v740_v37 = vmul.f32 %v3277_v34, %v3263_v57  ;;  %v770_v39 = vmul.f32 %v3277_v34, %v3265_v59  ;;  %v765_v40 = vmul.f32 %v753_v22, %v741_v30 }
 0x48a   :  { %v777_v41 = vmul.f32 %v771_v33, %v747_v21 }
 0x48b   :  { %2846 = vmatprep.mubr.msk.f32.mxu0 %vm191_vm4, %v780_v36  ;;  %v764_v42 = vmul.f32 %v751_v4, %v740_v37  ;;  %v776_v43 = vmul.f32 %v770_v39, %v745_v3  ;;  %v171_v39 = vld [vmem:[%s4133_s2 + $0x48] sm:$0xff] }
 0x48c   :  { %2847 = vmatmul.mubr.msk.f32.gmra.mrb[14].mxu0 %vm191_vm4, %v781_v35  ;;  %v783_v46 = vadd.f32 %v777_v41, %v765_v40  ;;  %v172_v40 = vld [vmem:[%s4133_s2 + $0x50] sm:$0xff] }
 0x48d   :  { %v782_v47 = vadd.f32 %v776_v43, %v764_v42  ;;  %v3105_v41 = vpack.c.bf16 %v172_v40, %v171_v39  ;;  %v173_v42 = vld [vmem:[%s4133_s2 + $0x58] sm:$0xff]  ;;  %v174_v43 = vld [vmem:[%s4133_s2 + $0x60] sm:$0xff] }
 0x48f   :  { %2849 = vmatprep.mubr.msk.f32.mxu0 %vm191_vm4, %v782_v47  ;;  %3106 = vmatprep.subr.bf16.mxu1 %v3105_v41  ;;  %v175_v47 = vld [vmem:[%s4133_s2 + $0x68] sm:$0xff] }
 0x490   :  { %2850 = vmatmul.mubr.msk.f32.gmra.mrb[16].mxu0 %vm191_vm4, %v783_v46  ;;  %3108 = vmatpush3.bf16.msra.mxu1 %v3105_v41  ;;  %v3109_v46 = vpack.c.bf16 %v174_v43, %v173_v42 }
 0x492   :  { %3110 = vmatprep.subr.bf16.mxu1 %v3109_v46 }
 0x494   :  { %3112 = vmatpush3.bf16.msra.mxu1 %v3109_v46 }
 0x55b   :  { %v2845_v38 = vpop.f32.mrb[12].mxu0 }
 0x55c   :  { %v898_v49 = vadd.f32 %v2845_v38, %v3487_v24  ;;  %v868_v50 = vpop.f32.mrb[13].mxu0  ;;  %v177_v38 = vld [vmem:[%s4133_s2 + $0x78] sm:$0xff] }
 0x55d   :  { %v897_v51 = vadd.f32 %v868_v50, %v3489_v25  ;;  %v178_v50 = vld [vmem:[%s4133_s2 + $0x80] sm:$0xff] }
 0x55e   :  { %v3651_v52 = vadd.f32 %v2531_v48, %v898_v49 }
 0x55f   :  { %v3653_v55 = vadd.f32 %v2531_v48, %v897_v51  ;;  %v2848_v44 = vpop.f32.mrb[14].mxu0  ;;  %v3117_v51 = vpack.c.bf16 %v178_v50, %v177_v38  ;;  %v186_v50 = vld [vmem:[%s4133_s2 + $0xc0] sm:$0xff] }
 0x560   :  { %v900_v45 = vadd.f32 %v2848_v44, %v3493_v27  ;;  %v878_v56 = vpop.f32.mrb[15].mxu0  ;;  %v916_v57 = vsel %vm191_vm4, %v3651_v52, 0.0  ;;  %v179_v44 = vld [vmem:[%s4133_s2 + $0x88] sm:$0xff] }
 0x561   :  { %v899_v58 = vadd.f32 %v878_v56, %v3495_v28  ;;  %917 = vadd.xlane.f32.xlu1 %v916_v57  ;;  %v913_v24 = vsel %vm191_vm4, %v3653_v55, 0.0 }
 0x562   :  { %v3661_v53 = vadd.f32 %v2531_v48, %v900_v45  ;;  %914 = vadd.xlane.f32.xlu0 %v913_v24  ;;  %v180_v45 = vld [vmem:[%s4133_s2 + $0x90] sm:$0xff] }
 0x563   :  { %v2851_v25 = vpop.f32.mrb[16].mxu0  ;;  %v3666_v61 = vadd.f32 %v2531_v48, %v899_v58  ;;  %v3121_v56 = vpack.c.bf16 %v180_v45, %v179_v44  ;;  %v187_v44 = vld [vmem:[%s4133_s2 + $0xc8] sm:$0xff]  ;;  %v188_v45 = vld [vmem:[%s4133_s2 + $0xd0] sm:$0xff] }
 0x564   :  { %v902_v54 = vadd.f32 %v2851_v25, %v3501_v31  ;;  %v888_v59 = vpop.f32.mrb[17].mxu0  ;;  %v922_v27 = vsel %vm191_vm4, %v3661_v53, 0.0 }
 0x565   :  { %v901_v62 = vadd.f32 %v888_v59, %v3503_v32  ;;  %v919_v31 = vsel %vm191_vm4, %v3666_v61, 0.0 }
 0x566   :  { %v3669_v0 = vadd.f32 %v2531_v48, %v902_v54  ;;  %923 = vadd.xlane.f32.xlu0 %v922_v27 }
 0x567   :  { %v3673_v1 = vadd.f32 %v2531_v48, %v901_v62  ;;  %v176_v48 = vld [vmem:[%s4133_s2 + $0x70] sm:$0xff] }
 0x568   :  { %v928_v28 = vsel %vm191_vm4, %v3669_v0, 0.0  ;;  %v3113_v49 = vpack.c.bf16 %v176_v48, %v175_v47  ;;  %v183_v47 = vld [vmem:[%s4133_s2 + $0xa8] sm:$0xff]  ;;  %v184_v48 = vld [vmem:[%s4133_s2 + $0xb0] sm:$0xff] }
 0x569   :  { %929 = vadd.xlane.f32.xlu1 %v928_v28  ;;  %v925_v2 = vsel %vm191_vm4, %v3673_v1, 0.0  ;;  %v3129_v38 = vpack.c.bf16 %v184_v48, %v183_v47 }
 0x56a   :  { %920 = vadd.xlane.f32.xlu0 %v919_v31  ;;  %3114 = vmatprep.subr.bf16.mxu0 %v3113_v49 }
 0x56b   :  { %3116 = vmatpush3.bf16.msra.mxu0 %v3113_v49  ;;  %v185_v49 = vld [vmem:[%s4133_s2 + $0xb8] sm:$0xff] }
 0x56c   :  { %3118 = vmatprep.subr.bf16.mxu0 %v3117_v51 }
 0x56e   :  { %926 = vadd.xlane.f32.xlu0 %v925_v2 }
 0x56f   :  { %3120 = vmatpush3.bf16.msra.mxu0 %v3117_v51  ;;  %v3133_v51 = vpack.c.bf16 %v186_v50, %v185_v49 }
 0x570   :  { %3122 = vmatprep.subr.bf16.mxu0 %v3121_v56 }
 0x573   :  { %3124 = vmatpush3.bf16.msra.mxu0 %v3121_v56  ;;  %v3137_v56 = vpack.c.bf16 %v188_v45, %v187_v44 }
 0x5ee   :  { %v918_v3 = vpop.xlane.xlu1 %917 }
 0x5ef   :  { %v932_v4 = vmul.f32 0.03125, %v918_v3  ;;  %v915_v32 = vpop.xlane.xlu0 %914 }
 0x5f0   :  { %v931_v5 = vmul.f32 0.03125, %v915_v32 }
 0x5f1   :  { %v3680_v6 = vsub.f32 %v3651_v52, %v932_v4 }
 0x5f2   :  { %v3683_v7 = vsub.f32 %v3653_v55, %v931_v5 }
 0x5f3   :  { %v924_v8 = vpop.xlane.xlu0 %923  ;;  %v944_v9 = vmul.f32 %v3680_v6, %v3680_v6 }
 0x5f4   :  { %v934_v10 = vmul.f32 0.03125, %v924_v8  ;;  %v943_v11 = vmul.f32 %v3683_v7, %v3683_v7 }
 0x5f5   :  { %v952_v12 = vsel %vm191_vm4, %v944_v9, 0.0 }
 0x5f6   :  { %v3691_v13 = vsub.f32 %v3661_v53, %v934_v10  ;;  %953 = vadd.xlane.f32.xlu1 %v952_v12  ;;  %v930_v14 = vpop.xlane.xlu1 %929  ;;  %v949_v15 = vsel %vm191_vm4, %v943_v11, 0.0  ;;  %v2532_v11 = vld [vmem:[%s4133_s2 + $0x24] ss:$0 sm:$0xff] }
 0x5f7   :  { %v936_v16 = vmul.f32 0.03125, %v930_v14  ;;  %950 = vadd.xlane.f32.xlu0 %v949_v15  ;;  %v921_v17 = vpop.xlane.xlu0 %920 }
 0x5f8   :  { %v933_v18 = vmul.f32 0.03125, %v921_v17  ;;  %v946_v19 = vmul.f32 %v3691_v13, %v3691_v13  ;;  %v2533_v17 = vld [vmem:[%s4133_s2 + $0x25] ss:$0 sm:$0xff] }
 0x5f9   :  { %v3697_v20 = vsub.f32 %v3669_v0, %v936_v16 }
 0x5fa   :  { %v3700_v21 = vsub.f32 %v3666_v61, %v933_v18  ;;  %v958_v22 = vsel %vm191_vm4, %v946_v19, 0.0 }
 0x5fb   :  { %959 = vadd.xlane.f32.xlu1 %v958_v22  ;;  %v927_v23 = vpop.xlane.xlu0 %926  ;;  %v948_v26 = vmul.f32 %v3697_v20, %v3697_v20 }
 0x5fc   :  { %v935_v29 = vmul.f32 0.03125, %v927_v23  ;;  %v945_v30 = vmul.f32 %v3700_v21, %v3700_v21 }
 0x5fd   :  { %v964_v33 = vsel %vm191_vm4, %v948_v26, 0.0 }
 0x5fe   :  { %v3709_v34 = vsub.f32 %v3673_v1, %v935_v29  ;;  %v955_v35 = vsel %vm191_vm4, %v945_v30, 0.0 }
 0x5ff   :  { %965 = vadd.xlane.f32.xlu1 %v964_v33  ;;  %956 = vadd.xlane.f32.xlu0 %v955_v35 }
 0x600   :  { %v947_v36 = vmul.f32 %v3709_v34, %v3709_v34 }
 0x602   :  { %v961_v37 = vsel %vm191_vm4, %v947_v36, 0.0 }
 0x603   :  { %962 = vadd.xlane.f32.xlu0 %v961_v37 }
 0x683   :  { %v954_v57 = vpop.xlane.xlu1 %953 }
 0x684   :  { %v968_v58 = vmul.f32 0.03125, %v954_v57  ;;  %v951_v24 = vpop.xlane.xlu0 %950  ;;  %v189_v57 = vld [vmem:[%s4133_s2 + $0xd8] sm:$0xff] }
 0x685   :  { %v967_v25 = vmul.f32 0.03125, %v951_v24 }
 0x686   :  { %v974_v54 = vadd.f32 1e-05, %v968_v58  ;;  %v190_v58 = vld [vmem:[%s4133_s2 + $0xe0] sm:$0xff] }
 0x687   :  { %v973_v59 = vadd.f32 1e-05, %v967_v25  ;;  %v3141_v24 = vpack.c.bf16 %v190_v58, %v189_v57  ;;  %v2534_v25 = vld [vmem:[%s4133_s2 + $0x26] ss:$0 sm:$0xff] }
 0x688   :  { %3278 = vrsqrt.f32 %v974_v54  ;;  %v960_v27 = vpop.xlane.xlu1 %959 }
 0x689   :  { %3280 = vrsqrt.f32 %v973_v59  ;;  %v970_v62 = vmul.f32 0.03125, %v960_v27 }
 0x68b   :  { %v976_v28 = vadd.f32 1e-05, %v970_v62 }
 0x68c   :  { %v966_v31 = vpop.xlane.xlu1 %965  ;;  %v957_v2 = vpop.xlane.xlu0 %956 }
 0x68d   :  { %3282 = vrsqrt.f32 %v976_v28  ;;  %v972_v3 = vmul.f32 0.03125, %v966_v31  ;;  %v969_v4 = vmul.f32 0.03125, %v957_v2 }
 0x68f   :  { %v978_v32 = vadd.f32 1e-05, %v972_v3  ;;  %v975_v5 = vadd.f32 1e-05, %v969_v4 }
 0x690   :  { %v963_v8 = vpop.xlane.xlu0 %962 }
 0x691   :  { %3284 = vrsqrt.f32 %v978_v32  ;;  %v971_v9 = vmul.f32 0.03125, %v963_v8 }
 0x692   :  { %v3279_v10 = vpop.eup %3278  ;;  %3286 = vrsqrt.f32 %v975_v5 }
 0x693   :  { %v3281_v12 = vpop.eup %3280  ;;  %v986_v14 = vmul.f32 %v3279_v10, %v3680_v6  ;;  %v977_v15 = vadd.f32 1e-05, %v971_v9 }
 0x694   :  { %v985_v16 = vmul.f32 %v3281_v12, %v3683_v7 }
 0x695   :  { %v996_v18 = vmul.f32 %v2532_v11, %v986_v14  ;;  %3288 = vrsqrt.f32 %v977_v15 }
 0x696   :  { %v995_v19 = vmul.f32 %v2532_v11, %v985_v16 }
 0x697   :  { %v3283_v22 = vpop.eup %3282  ;;  %v1006_v26 = vadd.f32 %v2533_v17, %v996_v18 }
 0x698   :  { %v1005_v23 = vadd.f32 %v2533_v17, %v995_v19  ;;  %v988_v29 = vmul.f32 %v3283_v22, %v3691_v13 }
 0x69a   :  { %2860 = vmatprep.mubr.msk.f32.mxu1 %vm191_vm4, %v1005_v23  ;;  %v998_v33 = vmul.f32 %v2532_v11, %v988_v29 }
 0x69b   :  { %v3285_v30 = vpop.eup %3284  ;;  %2861 = vmatmul.mubr.msk.f32.vlgmr.msra.gmra.mrb[12].mxu1 %vm191_vm4, %v1006_v26 }
 0x69c   :  { %v3287_v6 = vpop.eup %3286  ;;  %v990_v35 = vmul.f32 %v3285_v30, %v3697_v20  ;;  %v1008_v41 = vadd.f32 %v2533_v17, %v998_v33  ;;  %v181_v20 = vld [vmem:[%s4133_s2 + $0x98] sm:$0xff] }
 0x69d   :  { %v987_v7 = vmul.f32 %v3287_v6, %v3700_v21  ;;  %v182_v21 = vld [vmem:[%s4133_s2 + $0xa0] sm:$0xff] }
 0x69e   :  { %v1000_v43 = vmul.f32 %v2532_v11, %v990_v35 }
 0x69f   :  { %v3289_v36 = vpop.eup %3288  ;;  %v997_v37 = vmul.f32 %v2532_v11, %v987_v7 }
 0x6a0   :  { %v989_v39 = vmul.f32 %v3289_v36, %v3709_v34  ;;  %v1010_v46 = vadd.f32 %v2533_v17, %v1000_v43  ;;  %v3125_v34 = vpack.c.bf16 %v182_v21, %v181_v20 }
 0x6a1   :  { %v1007_v40 = vadd.f32 %v2533_v17, %v997_v37 }
 0x6a2   :  { %v999_v42 = vmul.f32 %v2532_v11, %v989_v39  ;;  %3126 = vmatprep.subr.bf16.mxu0 %v3125_v34 }
 0x6a3   :  { %2863 = vmatprep.mubr.msk.f32.mxu1 %vm191_vm4, %v1007_v40  ;;  %3128 = vmatpush3.bf16.msra.mxu0 %v3125_v34  ;;  %v2541_v34 = vld [vmem:[%s4133_s2 + $0x27] ss:$0 sm:$0xff] }
 0x6a4   :  { %2864 = vmatmul.mubr.msk.f32.gmra.mrb[14].mxu1 %vm191_vm4, %v1008_v41  ;;  %v1009_v13 = vadd.f32 %v2533_v17, %v999_v42  ;;  %3130 = vmatprep.subr.bf16.mxu0 %v3129_v38 }
 0x6a6   :  { %2866 = vmatprep.mubr.msk.f32.mxu1 %vm191_vm4, %v1009_v13 }
 0x6a7   :  { %3132 = vmatpush3.bf16.msra.mxu0 %v3129_v38 }
 0x6a8   :  { %2867 = vmatmul.mubr.msk.f32.gmra.mrb[16].mxu1 %vm191_vm4, %v1010_v46  ;;  %3134 = vmatprep.subr.bf16.mxu0 %v3133_v51 }
 0x6ab   :  { %3136 = vmatpush3.bf16.msra.mxu0 %v3133_v51 }
 0x6ac   :  { %3138 = vmatprep.subr.bf16.mxu0 %v3137_v56 }
 0x6af   :  { %3140 = vmatpush3.bf16.msra.mxu0 %v3137_v56 }
 0x6b0   :  { %3142 = vmatprep.subr.bf16.mxu0 %v3141_v24 }
 0x6b3   :  { %3144 = vmatpush3.bf16.msra.mxu0 %v3141_v24 }
 0x6b4   :  { %3162 = vmatprep.subr.bf16.mxu0 %v3583_v60 }
 0x76e   :  { %v2862_v54 = vpop.f32.mrb[12].mxu1 }
 0x76f   :  { %v1105_v59 = vadd.f32 %v2862_v54, %v2534_v25  ;;  %v1099_v27 = vpop.f32.mrb[13].mxu1 }
 0x770   :  { %v1100_v62 = vadd.f32 %v2534_v25, %v1099_v27 }
 0x771   :  { %v1135_v28 = vmul.f32 0.70710677, %v1105_v59  ;;  %v1129_v23 = vmul.f32 0.5, %v1105_v59 }
 0x772   :  { %v1134_v31 = vmul.f32 0.70710677, %v1100_v62  ;;  %v1128_v18 = vmul.f32 0.5, %v1100_v62 }
 0x773   :  { %3290 = verf.f32 %v1135_v28 }
 0x774   :  { %3292 = verf.f32 %v1134_v31 }
 0x777   :  { %v2865_v2 = vpop.f32.mrb[14].mxu1 }
 0x778   :  { %v1115_v3 = vadd.f32 %v2865_v2, %v2534_v25  ;;  %v1109_v4 = vpop.f32.mrb[15].mxu1 }
 0x779   :  { %v1110_v32 = vadd.f32 %v2534_v25, %v1109_v4 }
 0x77a   :  { %v1137_v5 = vmul.f32 0.70710677, %v1115_v3  ;;  %v1131_v36 = vmul.f32 0.5, %v1115_v3 }
 0x77b   :  { %v1136_v8 = vmul.f32 0.70710677, %v1110_v32  ;;  %v2868_v9 = vpop.f32.mrb[16].mxu1  ;;  %v1130_v33 = vmul.f32 0.5, %v1110_v32 }
 0x77c   :  { %3294 = verf.f32 %v1137_v5  ;;  %v1125_v10 = vadd.f32 %v2868_v9, %v2534_v25  ;;  %v1119_v11 = vpop.f32.mrb[17].mxu1 }
 0x77d   :  { %v3291_v12 = vpop.eup %3290  ;;  %3296 = verf.f32 %v1136_v8  ;;  %v1120_v14 = vadd.f32 %v2534_v25, %v1119_v11 }
 0x77e   :  { %v3293_v15 = vpop.eup %3292  ;;  %v1147_v16 = vadd.f32 1.0, %v3291_v12  ;;  %v1139_v17 = vmul.f32 0.70710677, %v1125_v10  ;;  %v1133_v46 = vmul.f32 0.5, %v1125_v10 }
 0x77f   :  { %v1146_v19 = vadd.f32 1.0, %v3293_v15  ;;  %v1138_v22 = vmul.f32 0.70710677, %v1120_v14  ;;  %v1132_v43 = vmul.f32 0.5, %v1120_v14 }
 0x780   :  { %3298 = verf.f32 %v1139_v17  ;;  %v1153_v29 = vmul.f32 %v1147_v16, %v1129_v23 }
 0x781   :  { %3300 = verf.f32 %v1138_v22  ;;  %v1152_v26 = vmul.f32 %v1146_v19, %v1128_v18 }
 0x783   :  { %2901 = vmatprep.mubr.f32.mxu0 %v1152_v26 }
 0x784   :  { %2902 = vmatmul.mubr.f32.vlgmr.msra.gmra.mrb[18].mxu0 %v1153_v29 }
 0x785   :  { %3164 = vmatpush3.bf16.msra.mxu0 %v3583_v60 }
 0x786   :  { %v3295_v30 = vpop.eup %3294  ;;  %3166 = vmatprep.subr.bf16.mxu0 %v3593_v63 }
 0x787   :  { %v3297_v6 = vpop.eup %3296  ;;  %v1149_v7 = vadd.f32 1.0, %v3295_v30 }
 0x788   :  { %v1148_v35 = vadd.f32 1.0, %v3297_v6 }
 0x789   :  { %3168 = vmatpush3.bf16.msra.mxu0 %v3593_v63  ;;  %v1155_v42 = vmul.f32 %v1149_v7, %v1131_v36 }
 0x78a   :  { %v3299_v37 = vpop.eup %3298  ;;  %v1154_v39 = vmul.f32 %v1148_v35, %v1130_v33 }
 0x78b   :  { %v3301_v40 = vpop.eup %3300  ;;  %v1151_v41 = vadd.f32 1.0, %v3299_v37 }
 0x78c   :  { %v1150_v13 = vadd.f32 1.0, %v3301_v40  ;;  %2904 = vmatprep.mubr.f32.mxu0 %v1154_v39 }
 0x78d   :  { %2905 = vmatmul.mubr.f32.gmra.mrb[20].mxu0 %v1155_v42  ;;  %v1157_v21 = vmul.f32 %v1151_v41, %v1133_v46  ;;  %v1269_v41 = vld [vmem:[%s4133_s2 + $0xe8] sm:$0xff]  ;;  %v1270_v42 = vld [vmem:[%s4133_s2 + $0xf0] sm:$0xff]  ;;  %v1272_v46 = vld [vmem:[%s4133_s2 + $0x100] sm:$0xff] }
 0x78e   :  { %v1156_v20 = vmul.f32 %v1150_v13, %v1132_v43  ;;  %v3145_v43 = vpack.c.bf16 %v1270_v42, %v1269_v41  ;;  %v1271_v13 = vld [vmem:[%s4133_s2 + $0xf8] sm:$0xff] }
 0x790   :  { %2907 = vmatprep.mubr.f32.mxu0 %v1156_v20  ;;  %3146 = vmatprep.subr.bf16.mxu1 %v3145_v43  ;;  %v3149_v20 = vpack.c.bf16 %v1272_v46, %v1271_v13 }
 0x791   :  { %2908 = vmatmul.mubr.f32.gmra.mrb[22].mxu0 %v1157_v21  ;;  %3148 = vmatpush3.bf16.msra.mxu1 %v3145_v43 }
 0x792   :  { %3150 = vmatprep.subr.bf16.mxu1 %v3149_v20 }
 0x795   :  { %3152 = vmatpush3.bf16.msra.mxu1 %v3149_v20 }
 0x796   :  { %3154 = vmatprep.subr.bf16.mxu1 %v3583_v60 }
 0x857   :  { %v2903_v47 = vpop.f32.mrb[18].mxu0 }
 0x858   :  { %v1254_v48 = vadd.f32 %v2903_v47, %v3651_v52  ;;  %v1224_v38 = vpop.f32.mrb[19].mxu0 }
 0x859   :  { %v1253_v49 = vadd.f32 %v1224_v38, %v3653_v55 }
 0x85a   :  { %v3805_v50 = vadd.f32 %v2541_v34, %v1254_v48 }
 0x85b   :  { %v3807_v51 = vadd.f32 %v2541_v34, %v1253_v49 }
 0x85c   :  { %v1308_v44 = vsel %vm191_vm4, %v3805_v50, 0.0 }
 0x85d   :  { %1309 = vadd.xlane.f32.xlu1 %v1308_v44  ;;  %v1305_v45 = vsel %vm191_vm4, %v3807_v51, 0.0 }
 0x85e   :  { %1306 = vadd.xlane.f32.xlu0 %v1305_v45 }
 0x860   :  { %v2906_v56 = vpop.f32.mrb[20].mxu0 }
 0x861   :  { %v1256_v57 = vadd.f32 %v2906_v56, %v3661_v53  ;;  %v1234_v58 = vpop.f32.mrb[21].mxu0 }
 0x862   :  { %v1255_v52 = vadd.f32 %v1234_v58, %v3666_v61 }
 0x863   :  { %v3815_v24 = vadd.f32 %v2541_v34, %v1256_v57 }
 0x864   :  { %v3817_v55 = vadd.f32 %v2541_v34, %v1255_v52  ;;  %v2909_v25 = vpop.f32.mrb[22].mxu0 }
 0x865   :  { %v1258_v54 = vadd.f32 %v2909_v25, %v3669_v0  ;;  %v1244_v59 = vpop.f32.mrb[23].mxu0  ;;  %v1314_v27 = vsel %vm191_vm4, %v3815_v24, 0.0 }
 0x866   :  { %v1257_v62 = vadd.f32 %v1244_v59, %v3673_v1  ;;  %1315 = vadd.xlane.f32.xlu1 %v1314_v27  ;;  %v1311_v53 = vsel %vm191_vm4, %v3817_v55, 0.0 }
 0x867   :  { %v3825_v28 = vadd.f32 %v2541_v34, %v1258_v54  ;;  %1312 = vadd.xlane.f32.xlu0 %v1311_v53 }
 0x868   :  { %v3827_v61 = vadd.f32 %v2541_v34, %v1257_v62  ;;  %v2542_v62 = vld [vmem:[%s4133_s2 + $0x109] ss:$0 sm:$0xff] }
 0x869   :  { %v1320_v31 = vsel %vm191_vm4, %v3825_v28, 0.0 }
 0x86a   :  { %1321 = vadd.xlane.f32.xlu1 %v1320_v31  ;;  %v1317_v0 = vsel %vm191_vm4, %v3827_v61, 0.0 }
 0x86b   :  { %1318 = vadd.xlane.f32.xlu0 %v1317_v0 }
 0x8ea   :  { %v1310_v2 = vpop.xlane.xlu1 %1309 }
 0x8eb   :  { %v1324_v3 = vmul.f32 0.03125, %v1310_v2  ;;  %v1307_v1 = vpop.xlane.xlu0 %1306 }
 0x8ec   :  { %v1323_v4 = vmul.f32 0.03125, %v1307_v1 }
 0x8ed   :  { %v3834_v32 = vsub.f32 %v3805_v50, %v1324_v3 }
 0x8ee   :  { %v3837_v5 = vsub.f32 %v3807_v51, %v1323_v4  ;;  %v2543_v4 = vld [vmem:[%s4133_s2 + $0x10a] ss:$0 sm:$0xff] }
 0x8ef   :  { %v1336_v8 = vmul.f32 %v3834_v32, %v3834_v32 }
 0x8f0   :  { %v1335_v9 = vmul.f32 %v3837_v5, %v3837_v5 }
 0x8f1   :  { %v1344_v10 = vsel %vm191_vm4, %v1336_v8, 0.0 }
 0x8f2   :  { %1345 = vadd.xlane.f32.xlu1 %v1344_v10  ;;  %v1341_v11 = vsel %vm191_vm4, %v1335_v9, 0.0 }
 0x8f3   :  { %v1316_v12 = vpop.xlane.xlu1 %1315  ;;  %1342 = vadd.xlane.f32.xlu0 %v1341_v11 }
 0x8f4   :  { %v1326_v14 = vmul.f32 0.03125, %v1316_v12  ;;  %v1313_v15 = vpop.xlane.xlu0 %1312 }
 0x8f5   :  { %v1325_v16 = vmul.f32 0.03125, %v1313_v15 }
 0x8f6   :  { %v3846_v17 = vsub.f32 %v3815_v24, %v1326_v14 }
 0x8f7   :  { %v3849_v18 = vsub.f32 %v3817_v55, %v1325_v16  ;;  %v1322_v19 = vpop.xlane.xlu1 %1321 }
 0x8f8   :  { %v1328_v22 = vmul.f32 0.03125, %v1322_v19  ;;  %v1319_v23 = vpop.xlane.xlu0 %1318  ;;  %v1338_v26 = vmul.f32 %v3846_v17, %v3846_v17 }
 0x8f9   :  { %v1327_v29 = vmul.f32 0.03125, %v1319_v23  ;;  %v1337_v30 = vmul.f32 %v3849_v18, %v3849_v18 }
 0x8fa   :  { %v3856_v6 = vsub.f32 %v3825_v28, %v1328_v22  ;;  %v1350_v7 = vsel %vm191_vm4, %v1338_v26, 0.0 }
 0x8fb   :  { %v3860_v33 = vsub.f32 %v3827_v61, %v1327_v29  ;;  %1351 = vadd.xlane.f32.xlu1 %v1350_v7  ;;  %v1347_v35 = vsel %vm191_vm4, %v1337_v30, 0.0 }
 0x8fc   :  { %1348 = vadd.xlane.f32.xlu0 %v1347_v35  ;;  %v1340_v36 = vmul.f32 %v3856_v6, %v3856_v6 }
 0x8fd   :  { %v1339_v37 = vmul.f32 %v3860_v33, %v3860_v33 }
 0x8fe   :  { %v1356_v39 = vsel %vm191_vm4, %v1340_v36, 0.0 }
 0x8ff   :  { %1357 = vadd.xlane.f32.xlu1 %v1356_v39  ;;  %v1353_v40 = vsel %vm191_vm4, %v1339_v37, 0.0 }
 0x900   :  { %1354 = vadd.xlane.f32.xlu0 %v1353_v40 }
 0x97f   :  { %v1346_v21 = vpop.xlane.xlu1 %1345 }
 0x980   :  { %v1360_v34 = vmul.f32 0.03125, %v1346_v21  ;;  %v1343_v47 = vpop.xlane.xlu0 %1342 }
 0x981   :  { %v1359_v48 = vmul.f32 0.03125, %v1343_v47 }
 0x982   :  { %v1366_v38 = vadd.f32 1e-05, %v1360_v34 }
 0x983   :  { %v1365_v49 = vadd.f32 1e-05, %v1359_v48 }
 0x984   :  { %3302 = vrsqrt.f32 %v1366_v38 }
 0x985   :  { %3304 = vrsqrt.f32 %v1365_v49 }
 0x988   :  { %v1352_v44 = vpop.xlane.xlu1 %1351 }
 0x989   :  { %v1362_v45 = vmul.f32 0.03125, %v1352_v44  ;;  %v1349_v56 = vpop.xlane.xlu0 %1348 }
 0x98a   :  { %v1361_v57 = vmul.f32 0.03125, %v1349_v56 }
 0x98b   :  { %v1368_v58 = vadd.f32 1e-05, %v1362_v45 }
 0x98c   :  { %v1367_v52 = vadd.f32 1e-05, %v1361_v57  ;;  %v1358_v25 = vpop.xlane.xlu1 %1357 }
 0x98d   :  { %3306 = vrsqrt.f32 %v1368_v58  ;;  %v1364_v54 = vmul.f32 0.03125, %v1358_v25  ;;  %v1355_v59 = vpop.xlane.xlu0 %1354 }
 0x98e   :  { %v3303_v27 = vpop.eup %3302  ;;  %3308 = vrsqrt.f32 %v1367_v52  ;;  %v1363_v53 = vmul.f32 0.03125, %v1355_v59 }
 0x98f   :  { %v3305_v31 = vpop.eup %3304  ;;  %v1378_v0 = vmul.f32 %v3303_v27, %v3834_v32  ;;  %v1370_v2 = vadd.f32 1e-05, %v1364_v54 }
 0x990   :  { %v1369_v3 = vadd.f32 1e-05, %v1363_v53  ;;  %v1377_v1 = vmul.f32 %v3305_v31, %v3837_v5  ;;  %v1281_v53 = vld [vmem:[%s4133_s2 + $0x110] sm:$0xff]  ;;  %v1282_v31 = vld [vmem:[%s4133_s2 + $0x118] sm:$0xff] }
 0x991   :  { %v1388_v8 = vmul.f32 %v2542_v62, %v1378_v0  ;;  %3310 = vrsqrt.f32 %v1370_v2  ;;  %v3169_v0 = vpack.c.bf16 %v1282_v31, %v1281_v53  ;;  %v1283_v2 = vld [vmem:[%s4133_s2 + $0x120] sm:$0xff] }
 0x992   :  { %3312 = vrsqrt.f32 %v1369_v3  ;;  %v1387_v9 = vmul.f32 %v2542_v62, %v1377_v1  ;;  %v1284_v3 = vld [vmem:[%s4133_s2 + $0x128] sm:$0xff] }
 0x993   :  { %v1398_v11 = vadd.f32 %v2543_v4, %v1388_v8  ;;  %v3173_v1 = vpack.c.bf16 %v1284_v3, %v1283_v2 }
 0x994   :  { %v1397_v10 = vadd.f32 %v2543_v4, %v1387_v9 }
 0x996   :  { %2918 = vmatprep.mubr.msk.f32.mxu1 %vm191_vm4, %v1397_v10 }
 0x997   :  { %v3307_v12 = vpop.eup %3306  ;;  %2919 = vmatmul.mubr.msk.f32.vlgmr.msra.gmra.mrb[18].mxu1 %vm191_vm4, %v1398_v11 }
 0x998   :  { %v3309_v32 = vpop.eup %3308  ;;  %v1380_v14 = vmul.f32 %v3307_v12, %v3846_v17  ;;  %3156 = vmatpush3.bf16.msra.mxu1 %v3583_v60 }
 0x999   :  { %v1379_v5 = vmul.f32 %v3309_v32, %v3849_v18  ;;  %3158 = vmatprep.subr.bf16.mxu1 %v3593_v63 }
 0x99a   :  { %v1390_v15 = vmul.f32 %v2542_v62, %v1380_v14 }
 0x99b   :  { %v3311_v16 = vpop.eup %3310  ;;  %v1389_v19 = vmul.f32 %v2542_v62, %v1379_v5 }
 0x99c   :  { %v3313_v22 = vpop.eup %3312  ;;  %v1382_v23 = vmul.f32 %v3311_v16, %v3856_v6  ;;  %3160 = vmatpush3.bf16.msra.mxu1 %v3593_v63  ;;  %v1400_v30 = vadd.f32 %v2543_v4, %v1390_v15  ;;  %v2544_v63 = vld [vmem:[%s4133_s2 + $0x108] ss:$0 sm:$0xff] }
 0x99d   :  { %v1399_v26 = vadd.f32 %v2543_v4, %v1389_v19  ;;  %v1381_v29 = vmul.f32 %v3313_v22, %v3860_v33  ;;  %3170 = vmatprep.subr.bf16.mxu1 %v3169_v0 }
 0x99e   :  { %v1392_v7 = vmul.f32 %v2542_v62, %v1382_v23 }
 0x99f   :  { %2921 = vmatprep.mubr.msk.f32.mxu1 %vm191_vm4, %v1399_v26  ;;  %v1391_v60 = vmul.f32 %v2542_v62, %v1381_v29 }
 0x9a0   :  { %2922 = vmatmul.mubr.msk.f32.gmra.mrb[20].mxu1 %vm191_vm4, %v1400_v30  ;;  %v1402_v18 = vadd.f32 %v2543_v4, %v1392_v7 }
 0x9a1   :  { %v1401_v17 = vadd.f32 %v2543_v4, %v1391_v60 }
 0x9a3   :  { %2924 = vmatprep.mubr.msk.f32.mxu1 %vm191_vm4, %v1401_v17 }
 0x9a4   :  { %2925 = vmatmul.mubr.msk.f32.gmra.mrb[22].mxu1 %vm191_vm4, %v1402_v18 }
 0xa6a   :  { %v2920_v6 = vpop.f32.mrb[18].mxu1 }
 0xa6b   :  { %v1497_v35 = vadd.f32 %v2920_v6, %v2544_v63  ;;  %v1491_v33 = vpop.f32.mrb[19].mxu1 }
 0xa6c   :  { %v1492_v36 = vadd.f32 %v2544_v63, %v1491_v33 }
 0xa6d   :  { %1528 = vrot.lane.b32.xlu1 %v1497_v35, %s3401_s15 }
 0xa6e   :  { %1526 = vrot.lane.b32.xlu0 %v1492_v36, %s3401_s15 }
 0xa73   :  { %v2923_v37 = vpop.f32.mrb[20].mxu1 }
 0xa74   :  { %v1507_v39 = vadd.f32 %v2923_v37, %v2544_v63  ;;  %v1501_v40 = vpop.f32.mrb[21].mxu1 }
 0xa75   :  { %v1502_v41 = vadd.f32 %v2544_v63, %v1501_v40 }
 0xa76   :  { %1532 = vrot.lane.b32.xlu1 %v1507_v39, %s3401_s15 }
 0xa77   :  { %1530 = vrot.lane.b32.xlu0 %v1502_v41, %s3401_s15  ;;  %v2926_v42 = vpop.f32.mrb[22].mxu1 }
 0xa78   :  { %v1511_v43 = vpop.f32.mrb[23].mxu1  ;;  %v1517_v46 = vadd.f32 %v2926_v42, %v2544_v63 }
 0xa79   :  { %v1512_v13 = vadd.f32 %v2544_v63, %v1511_v43 }
 0xa7b   :  { %1854 = vrot.lane.b32.xlu0 %v1492_v36, %s3402_s16  ;;  %1534 = vrot.lane.b32.xlu1 %v1512_v13, %s3401_s15 }
 0xa7f   :  { %1856 = vrot.lane.b32.xlu0 %v1497_v35, %s3402_s16  ;;  %1536 = vrot.lane.b32.xlu1 %v1517_v46, %s3401_s15 }
 0xa83   :  { %1858 = vrot.lane.b32.xlu0 %v1502_v41, %s3402_s16  ;;  %1860 = vrot.lane.b32.xlu1 %v1507_v39, %s3402_s16 }
 0xa87   :  { %1862 = vrot.lane.b32.xlu1 %v1512_v13, %s3402_s16 }
 0xa8b   :  { %1864 = vrot.lane.b32.xlu1 %v1517_v46, %s3402_s16 }
 0xadf   :  { %v1529_v20 = vpop.permute.xlu1 %1528 }
 0xae0   :  { %v1527_v21 = vpop.permute.xlu0 %1526  ;;  %v1545_v47 = vmul.f32 %v1529_v20, %v1497_v35  ;;  %v1673_v27 = vmul.f32 %v1529_v20, %v1512_v13 }
 0xae1   :  { %v1544_v34 = vmul.f32 %v1527_v21, %v1492_v36  ;;  %v1672_v59 = vmul.f32 %v1527_v21, %v1507_v39 }
 0xae3   :  { %2935 = vmatprep.mubr.msk.f32.mxu1 %vm191_vm4, %v1544_v34 }
 0xae4   :  { %2936 = vmatmul.mubr.msk.f32.vlgmr.msra.gmra.mrb[24].mxu1 %vm191_vm4, %v1545_v47 }
 0xae5   :  { %3172 = vmatpush3.bf16.msra.mxu1 %v3169_v0 }
 0xae6   :  { %3174 = vmatprep.subr.bf16.mxu1 %v3173_v1 }
 0xae8   :  { %v1533_v48 = vpop.permute.xlu1 %1532 }
 0xae9   :  { %v1669_v38 = vmul.f32 %v1533_v48, %v1492_v36  ;;  %v1531_v49 = vpop.permute.xlu0 %1530  ;;  %v1547_v45 = vmul.f32 %v1533_v48, %v1507_v39  ;;  %3176 = vmatpush3.bf16.msra.mxu1 %v3173_v1 }
 0xaea   :  { %v1546_v44 = vmul.f32 %v1531_v49, %v1502_v41  ;;  %v1674_v62 = vmul.f32 %v1531_v49, %v1517_v46 }
 0xaeb   :  { %2952 = vmatprep.mubr.msk.f32.mxu0 %vm191_vm4, %v1669_v38 }
 0xaec   :  { %2938 = vmatprep.mubr.msk.f32.mxu1 %vm191_vm4, %v1546_v44 }
 0xaed   :  { %v1535_v56 = vpop.permute.xlu1 %1534  ;;  %2939 = vmatmul.mubr.msk.f32.gmra.mrb[26].mxu1 %vm191_vm4, %v1547_v45 }
 0xaee   :  { %v1548_v57 = vmul.f32 %v1535_v56, %v1512_v13  ;;  %v1670_v58 = vmul.f32 %v1535_v56, %v1497_v35 }
 0xaf0   :  { %2941 = vmatprep.mubr.msk.f32.mxu1 %vm191_vm4, %v1548_v57  ;;  %2953 = vmatmul.mubr.msk.f32.vlgmr.msra.gmra.mrb[24].mxu0 %vm191_vm4, %v1670_v58 }
 0xaf1   :  { %v1537_v52 = vpop.permute.xlu1 %1536 }
 0xaf2   :  { %v1549_v25 = vmul.f32 %v1537_v52, %v1517_v46  ;;  %v1671_v54 = vmul.f32 %v1537_v52, %v1502_v41 }
 0xaf4   :  { %2942 = vmatmul.mubr.msk.f32.gmra.mrb[28].mxu1 %vm191_vm4, %v1549_v25  ;;  %2955 = vmatprep.mubr.msk.f32.mxu0 %vm191_vm4, %v1671_v54 }
 0xaf5   :  { %2956 = vmatmul.mubr.msk.f32.gmra.mrb[26].mxu0 %vm191_vm4, %v1672_v59 }
 0xaf6   :  { %2958 = vmatprep.mubr.msk.f32.mxu0 %vm191_vm4, %v1673_v27 }
 0xaf9   :  { %2959 = vmatmul.mubr.msk.f32.gmra.mrb[28].mxu0 %vm191_vm4, %v1674_v62 }
 0xbb7   :  { %v2937_v4 = vpop.f32.mrb[24].mxu1 }
 0xbb8   :  { %v1634_v8 = vpop.f32.mrb[25].mxu1  ;;  %v1664_v12 = vmul.f32 0.35355338, %v2937_v4 }
 0xbb9   :  { %v1663_v5 = vmul.f32 0.35355338, %v1634_v8 }
 0xbc0   :  { %v2940_v9 = vpop.f32.mrb[26].mxu1 }
 0xbc1   :  { %v1644_v10 = vpop.f32.mrb[27].mxu1  ;;  %v1666_v23 = vmul.f32 0.35355338, %v2940_v9 }
 0xbc2   :  { %v1665_v60 = vmul.f32 0.35355338, %v1644_v10 }
 0xbc3   :  { %v2954_v11 = vpop.f32.mrb[24].mxu0 }
 0xbc4   :  { %v1789_v32 = vmul.f32 0.35355338, %v2954_v11  ;;  %v1759_v14 = vpop.f32.mrb[25].mxu0 }
 0xbc5   :  { %v1788_v15 = vmul.f32 0.35355338, %v1759_v14 }
 0xbc6   :  { %v1795_v16 = vmax.f32 %v1664_v12, %v1789_v32 }
 0xbc7   :  { %v1794_v19 = vmax.f32 %v1663_v5, %v1788_v15  ;;  %v2943_v22 = vpop.f32.mrb[28].mxu1 }
 0xbc8   :  { %v1801_v26 = vsub.f32 %v1664_v12, %v1795_v16  ;;  %v1819_v29 = vsub.f32 %v1789_v32, %v1795_v16  ;;  %v1654_v30 = vpop.f32.mrb[29].mxu1  ;;  %v2957_v7 = vpop.f32.mrb[26].mxu0  ;;  %v1668_v41 = vmul.f32 0.35355338, %v2943_v22 }
 0xbc9   :  { %v1800_v17 = vsub.f32 %v1663_v5, %v1794_v19  ;;  %v1818_v18 = vsub.f32 %v1788_v15, %v1794_v19  ;;  %v1791_v63 = vmul.f32 0.35355338, %v2957_v7  ;;  %v1769_v6 = vpop.f32.mrb[27].mxu0  ;;  %v1667_v42 = vmul.f32 0.35355338, %v1654_v30  ;;  %v1855_v16 = vpop.permute.xlu0 %1854 }
 0xbca   :  { %v1808_v35 = vmul.f32 1.442695, %v1801_v26  ;;  %v1826_v33 = vmul.f32 1.442695, %v1819_v29  ;;  %v1790_v36 = vmul.f32 0.35355338, %v1769_v6  ;;  %v1861_v19 = vpop.permute.xlu1 %1860 }
 0xbcb   :  { %v1806_v37 = vmul.f32 1.442695, %v1800_v17  ;;  %v1824_v39 = vmul.f32 1.442695, %v1818_v18  ;;  %v1797_v40 = vmax.f32 %v1666_v23, %v1791_v63 }
 0xbcc   :  { %3314 = vpow2.f32 %v1808_v35  ;;  %v1796_v43 = vmax.f32 %v1665_v60, %v1790_v36  ;;  %v2960_v13 = vpop.f32.mrb[28].mxu0 }
 0xbcd   :  { %3316 = vpow2.f32 %v1826_v33  ;;  %v1803_v46 = vsub.f32 %v1666_v23, %v1797_v40  ;;  %v1821_v20 = vsub.f32 %v1791_v63, %v1797_v40  ;;  %v1793_v21 = vmul.f32 0.35355338, %v2960_v13  ;;  %v1779_v34 = vpop.f32.mrb[29].mxu0  ;;  %v1857_v18 = vpop.permute.xlu0 %1856 }
 0xbce   :  { %3318 = vpow2.f32 %v1806_v37  ;;  %v1802_v47 = vsub.f32 %v1665_v60, %v1796_v43  ;;  %v1820_v48 = vsub.f32 %v1790_v36, %v1796_v43  ;;  %v1792_v38 = vmul.f32 0.35355338, %v1779_v34  ;;  %v1863_v63 = vpop.permute.xlu1 %1862 }
 0xbcf   :  { %3320 = vpow2.f32 %v1824_v39  ;;  %v1812_v49 = vmul.f32 1.442695, %v1803_v46  ;;  %v1830_v44 = vmul.f32 1.442695, %v1821_v20  ;;  %v1799_v45 = vmax.f32 %v1668_v41, %v1793_v21 }
 0xbd0   :  { %v1810_v56 = vmul.f32 1.442695, %v1802_v47  ;;  %v1828_v57 = vmul.f32 1.442695, %v1820_v48  ;;  %v1798_v58 = vmax.f32 %v1667_v42, %v1792_v38 }
 0xbd1   :  { %3322 = vpow2.f32 %v1812_v49  ;;  %v1805_v52 = vsub.f32 %v1668_v41, %v1799_v45  ;;  %v1823_v25 = vsub.f32 %v1793_v21, %v1799_v45 }
 0xbd2   :  { %3324 = vpow2.f32 %v1830_v44  ;;  %v1804_v54 = vsub.f32 %v1667_v42, %v1798_v58  ;;  %v1822_v59 = vsub.f32 %v1792_v38, %v1798_v58  ;;  %v1859_v38 = vpop.permute.xlu0 %1858  ;;  %v1865_v49 = vpop.permute.xlu1 %1864 }
 0xbd3   :  { %3326 = vpow2.f32 %v1810_v56  ;;  %v1816_v27 = vmul.f32 1.442695, %v1805_v52  ;;  %v1834_v62 = vmul.f32 1.442695, %v1823_v25 }
 0xbd4   :  { %3328 = vpow2.f32 %v1828_v57  ;;  %v1814_v53 = vmul.f32 1.442695, %v1804_v54  ;;  %v1832_v31 = vmul.f32 1.442695, %v1822_v59 }
 0xbd5   :  { %3330 = vpow2.f32 %v1816_v27 }
 0xbd6   :  { %v3315_v0 = vpop.eup %3314  ;;  %3332 = vpow2.f32 %v1834_v62 }
 0xbd7   :  { %v3317_v2 = vpop.eup %3316  ;;  %3334 = vpow2.f32 %v1814_v53 }
 0xbd8   :  { %v3319_v3 = vpop.eup %3318  ;;  %v1837_v1 = vadd.f32 %v3317_v2, %v3315_v0  ;;  %3336 = vpow2.f32 %v1832_v31 }
 0xbd9   :  { %v3321_v4 = vpop.eup %3320 }
 0xbda   :  { %3338 = vrcp.f32 %v1837_v1  ;;  %v1836_v8 = vadd.f32 %v3321_v4, %v3319_v3  ;;  %v2569_v1 = vld [vmem:[%s4133_s2 + $0x10b] ss:$0 sm:$0xff] }
 0xbdb   :  { %v3323_v9 = vpop.eup %3322 }
 0xbdc   :  { %v3325_v10 = vpop.eup %3324  ;;  %3340 = vrcp.f32 %v1836_v8 }
 0xbdd   :  { %v3327_v11 = vpop.eup %3326  ;;  %v1839_v12 = vadd.f32 %v3325_v10, %v3323_v9 }
 0xbde   :  { %v3329_v32 = vpop.eup %3328 }
 0xbdf   :  { %v3331_v14 = vpop.eup %3330  ;;  %3342 = vrcp.f32 %v1839_v12  ;;  %v1838_v5 = vadd.f32 %v3329_v32, %v3327_v11 }
 0xbe0   :  { %v3333_v15 = vpop.eup %3332 }
 0xbe1   :  { %v3335_v22 = vpop.eup %3334  ;;  %3344 = vrcp.f32 %v1838_v5  ;;  %v1841_v23 = vadd.f32 %v3333_v15, %v3331_v14 }
 0xbe2   :  { %v3337_v26 = vpop.eup %3336 }
 0xbe3   :  { %3346 = vrcp.f32 %v1841_v23  ;;  %v1840_v29 = vadd.f32 %v3337_v26, %v3335_v22 }
 0xbe4   :  { %v3339_v30 = vpop.eup %3338 }
 0xbe5   :  { %v1849_v7 = vmul.f32 %v3339_v30, %v3315_v0  ;;  %v1879_v60 = vmul.f32 %v3339_v30, %v3317_v2  ;;  %3348 = vrcp.f32 %v1840_v29 }
 0xbe6   :  { %v3341_v17 = vpop.eup %3340 }
 0xbe7   :  { %v1873_v6 = vmul.f32 %v1857_v18, %v1849_v7  ;;  %v1885_v35 = vmul.f32 %v1879_v60, %v1863_v63  ;;  %v1848_v33 = vmul.f32 %v3341_v17, %v3319_v3  ;;  %v1878_v36 = vmul.f32 %v3341_v17, %v3321_v4 }
 0xbe9   :  { %v3343_v37 = vpop.eup %3342  ;;  %v1872_v39 = vmul.f32 %v1855_v16, %v1848_v33  ;;  %v1884_v40 = vmul.f32 %v1878_v36, %v1861_v19  ;;  %v1891_v41 = vadd.f32 %v1885_v35, %v1873_v6 }
 0xbea   :  { %v1851_v42 = vmul.f32 %v3343_v37, %v3323_v9  ;;  %v1881_v43 = vmul.f32 %v3343_v37, %v3325_v10 }
 0xbeb   :  { %v3345_v13 = vpop.eup %3344  ;;  %v1890_v46 = vadd.f32 %v1884_v40, %v1872_v39 }
 0xbec   :  { %v1850_v20 = vmul.f32 %v3345_v13, %v3327_v11  ;;  %v1880_v21 = vmul.f32 %v3345_v13, %v3329_v32  ;;  %v1875_v34 = vmul.f32 %v1861_v19, %v1851_v42  ;;  %v1887_v47 = vmul.f32 %v1881_v43, %v1855_v16 }
 0xbed   :  { %v3347_v48 = vpop.eup %3346  ;;  %2969 = vmatprep.mubr.msk.f32.mxu1 %vm191_vm4, %v1890_v46 }
 0xbee   :  { %2970 = vmatmul.mubr.msk.f32.vlgmr.msra.gmra.mrb[30].mxu1 %vm191_vm4, %v1891_v41  ;;  %v1874_v44 = vmul.f32 %v1859_v38, %v1850_v20  ;;  %v1886_v45 = vmul.f32 %v1880_v21, %v1865_v49  ;;  %v1893_v56 = vadd.f32 %v1887_v47, %v1875_v34  ;;  %v1853_v57 = vmul.f32 %v3347_v48, %v3331_v14  ;;  %v1285_v47 = vld [vmem:[%s4133_s2 + $0x130] sm:$0xff] }
 0xbef   :  { %v3349_v58 = vpop.eup %3348  ;;  %v1883_v52 = vmul.f32 %v3347_v48, %v3333_v15  ;;  %v1286_v48 = vld [vmem:[%s4133_s2 + $0x138] sm:$0xff] }
 0xbf0   :  { %v1892_v25 = vadd.f32 %v1886_v45, %v1874_v44  ;;  %v1852_v54 = vmul.f32 %v3349_v58, %v3335_v22  ;;  %v1882_v59 = vmul.f32 %v3349_v58, %v3337_v26  ;;  %v1877_v27 = vmul.f32 %v1865_v49, %v1853_v57  ;;  %v1287_v49 = vld [vmem:[%s4133_s2 + $0x140] sm:$0xff]  ;;  %v1288_v44 = vld [vmem:[%s4133_s2 + $0x148] sm:$0xff] }
 0xbf1   :  { %v1889_v62 = vmul.f32 %v1883_v52, %v1859_v38  ;;  %v3177_v38 = vpack.c.bf16 %v1286_v48, %v1285_v47  ;;  %v3181_v45 = vpack.c.bf16 %v1288_v44, %v1287_v49  ;;  %v1300_v47 = vld [vmem:[%s4133_s2 + $0x1a8] sm:$0xff]  ;;  %v1302_v49 = vld [vmem:[%s4133_s2 + $0x1b8] sm:$0xff] }
 0xbf2   :  { %2972 = vmatprep.mubr.msk.f32.mxu1 %vm191_vm4, %v1892_v25  ;;  %v1876_v53 = vmul.f32 %v1863_v63, %v1852_v54  ;;  %v1888_v31 = vmul.f32 %v1882_v59, %v1857_v18 }
 0xbf3   :  { %2973 = vmatmul.mubr.msk.f32.gmra.mrb[32].mxu1 %vm191_vm4, %v1893_v56  ;;  %v1895_v0 = vadd.f32 %v1889_v62, %v1877_v27  ;;  %3178 = vmatprep.subr.bf16.mxu0 %v3177_v38 }
 0xbf4   :  { %v1894_v2 = vadd.f32 %v1888_v31, %v1876_v53  ;;  %3180 = vmatpush3.bf16.msra.mxu0 %v3177_v38  ;;  %v1301_v38 = vld [vmem:[%s4133_s2 + $0x1b0] sm:$0xff] }
 0xbf5   :  { %3182 = vmatprep.subr.bf16.mxu0 %v3181_v45  ;;  %v3209_v44 = vpack.c.bf16 %v1302_v49, %v1301_v38 }
 0xbf6   :  { %2975 = vmatprep.mubr.msk.f32.mxu1 %vm191_vm4, %v1894_v2 }
 0xbf7   :  { %2976 = vmatmul.mubr.msk.f32.gmra.mrb[34].mxu1 %vm191_vm4, %v1895_v0 }
 0xbf8   :  { %3184 = vmatpush3.bf16.msra.mxu0 %v3181_v45  ;;  %v1303_v45 = vld [vmem:[%s4133_s2 + $0x1c0] sm:$0xff] }
 0xcc1   :  { %v2971_v3 = vpop.f32.mrb[30].mxu1 }
 0xcc2   :  { %v2010_v4 = vadd.f32 %v2971_v3, %v3805_v50  ;;  %v1980_v8 = vpop.f32.mrb[31].mxu1 }
 0xcc3   :  { %v2009_v9 = vadd.f32 %v1980_v8, %v3807_v51 }
 0xcc4   :  { %v2020_v10 = vadd.f32 %v2569_v1, %v2010_v4 }
 0xcc5   :  { %v3953_v11 = vadd.f32 %v2569_v1, %v2009_v9  ;;  %v4003_v9 = vld [vmem:[%s4133_s2 + $0x10c] ss:$0 sm:$0xff] }
 0xcc6   :  { %v2974_v12 = vpop.f32.mrb[32].mxu1  ;;  %v2028_v32 = vsel %vm191_vm4, %v2020_v10, 0.0 }
 0xcc7   :  { %2029 = vadd.xlane.f32.xlu1 %v2028_v32  ;;  %v1990_v14 = vpop.f32.mrb[33].mxu1  ;;  %v2025_v5 = vsel %vm191_vm4, %v3953_v11, 0.0  ;;  %v2012_v15 = vadd.f32 %v2974_v12, %v3815_v24 }
 0xcc8   :  { %v2011_v16 = vadd.f32 %v1990_v14, %v3817_v55  ;;  %2026 = vadd.xlane.f32.xlu0 %v2025_v5 }
 0xcc9   :  { %v3961_v23 = vadd.f32 %v2569_v1, %v2012_v15 }
 0xcca   :  { %v2977_v50 = vpop.f32.mrb[34].mxu1  ;;  %v2021_v19 = vadd.f32 %v2569_v1, %v2011_v16 }
 0xccb   :  { %v2014_v51 = vadd.f32 %v2977_v50, %v3825_v28  ;;  %v2000_v22 = vpop.f32.mrb[35].mxu1  ;;  %v2034_v24 = vsel %vm191_vm4, %v3961_v23, 0.0  ;;  %v4014_v50 = vld [vmem:[%s4133_s2 + $0x10d] ss:$0 sm:$0xff] }
 0xccc   :  { %v2013_v26 = vadd.f32 %v2000_v22, %v3827_v61  ;;  %v2031_v29 = vsel %vm191_vm4, %v2021_v19, 0.0 }
 0xccd   :  { %2032 = vadd.xlane.f32.xlu0 %v2031_v29  ;;  %v3965_v30 = vadd.f32 %v2569_v1, %v2014_v51 }
 0xcce   :  { %v2023_v7 = vadd.f32 %v2569_v1, %v2013_v26 }
 0xccf   :  { %v2040_v34 = vsel %vm191_vm4, %v3965_v30, 0.0 }
 0xcd0   :  { %v2037_v20 = vsel %vm191_vm4, %v2023_v7, 0.0 }
 0xcd1   :  { %2035 = vadd.xlane.f32.xlu0 %v2034_v24 }
 0xd54   :  { %v2030_v55 = vpop.xlane.xlu1 %2029 }
 0xd55   :  { %v2044_v60 = vmul.f32 0.03125, %v2030_v55  ;;  %v2027_v17 = vpop.xlane.xlu0 %2026 }
 0xd56   :  { %v2043_v18 = vmul.f32 0.03125, %v2027_v17 }
 0xd57   :  { %v2050_v28 = vsub.f32 %v2020_v10, %v2044_v60 }
 0xd58   :  { %v2049_v63 = vsub.f32 %v3953_v11, %v2043_v18 }
 0xd59   :  { %v2056_v6 = vmul.f32 %v2050_v28, %v2050_v28 }
 0xd5a   :  { %v2033_v35 = vpop.xlane.xlu0 %2032  ;;  %v2055_v61 = vmul.f32 %v2049_v63, %v2049_v63 }
 0xd5b   :  { %v2045_v33 = vmul.f32 0.03125, %v2033_v35  ;;  %v2064_v36 = vsel %vm191_vm4, %v2056_v6, 0.0  ;;  %v1289_v6 = vld [vmem:[%s4133_s2 + $0x150] sm:$0xff]  ;;  %v1290_v35 = vld [vmem:[%s4133_s2 + $0x158] sm:$0xff] }
 0xd5c   :  { %2065 = vadd.xlane.f32.xlu1 %v2064_v36  ;;  %v2061_v37 = vsel %vm191_vm4, %v2055_v61, 0.0  ;;  %v1291_v61 = vld [vmem:[%s4133_s2 + $0x160] sm:$0xff]  ;;  %v1292_v36 = vld [vmem:[%s4133_s2 + $0x168] sm:$0xff] }
 0xd5d   :  { %v3972_v39 = vsub.f32 %v2021_v19, %v2045_v33  ;;  %2062 = vadd.xlane.f32.xlu0 %v2061_v37  ;;  %v3185_v33 = vpack.c.bf16 %v1290_v35, %v1289_v6  ;;  %v3189_v37 = vpack.c.bf16 %v1292_v36, %v1291_v61 }
 0xd5e   :  { %v2036_v40 = vpop.xlane.xlu0 %2035 }
 0xd5f   :  { %v2046_v41 = vmul.f32 0.03125, %v2036_v40  ;;  %v2057_v42 = vmul.f32 %v3972_v39, %v3972_v39  ;;  %v1294_v40 = vld [vmem:[%s4133_s2 + $0x178] sm:$0xff]  ;;  %3186 = vmatprep.subr.bf16.mxu1 %v3185_v33 }
 0xd60   :  { %3188 = vmatpush3.bf16.msra.mxu1 %v3185_v33 }
 0xd61   :  { %v3977_v43 = vsub.f32 %v3961_v23, %v2046_v41  ;;  %v2067_v13 = vsel %vm191_vm4, %v2057_v42, 0.0  ;;  %3190 = vmatprep.subr.bf16.mxu1 %v3189_v37  ;;  %v1295_v42 = vld [vmem:[%s4133_s2 + $0x180] sm:$0xff] }
 0xd62   :  { %2068 = vadd.xlane.f32.xlu0 %v2067_v13 }
 0xd63   :  { %v2058_v46 = vmul.f32 %v3977_v43, %v3977_v43 }
 0xd64   :  { %3192 = vmatpush3.bf16.msra.mxu1 %v3189_v37 }
 0xd65   :  { %v2070_v21 = vsel %vm191_vm4, %v2058_v46, 0.0  ;;  %v1297_v46 = vld [vmem:[%s4133_s2 + $0x190] sm:$0xff] }
 0xd66   :  { %2038 = vadd.xlane.f32.xlu0 %v2037_v20  ;;  %2071 = vadd.xlane.f32.xlu1 %v2070_v21  ;;  %v1298_v20 = vld [vmem:[%s4133_s2 + $0x198] sm:$0xff] }
 0xd67   :  { %v3201_v21 = vpack.c.bf16 %v1298_v20, %v1297_v46 }
 0xd6a   :  { %2041 = vadd.xlane.f32.xlu1 %v2040_v34  ;;  %v1299_v34 = vld [vmem:[%s4133_s2 + $0x1a0] sm:$0xff] }
 0xd6b   :  { %v3205_v48 = vpack.c.bf16 %v1300_v47, %v1299_v34 }
 0xde9   :  { %v2066_v56 = vpop.xlane.xlu1 %2065 }
 0xdea   :  { %v2080_v57 = vmul.f32 0.03125, %v2066_v56  ;;  %v2063_v58 = vpop.xlane.xlu0 %2062  ;;  %v1304_v56 = vld [vmem:[%s4133_s2 + $0x1c8] sm:$0xff] }
 0xdeb   :  { %v2079_v52 = vmul.f32 0.03125, %v2063_v58 }
 0xdec   :  { %v2086_v25 = vadd.f32 1e-05, %v2080_v57  ;;  %v3213_v57 = vpack.c.bf16 %v1304_v56, %v1303_v45 }
 0xded   :  { %v2085_v54 = vadd.f32 1e-05, %v2079_v52 }
 0xdee   :  { %3350 = vrsqrt.f32 %v2086_v25 }
 0xdef   :  { %3352 = vrsqrt.f32 %v2085_v54  ;;  %v2069_v59 = vpop.xlane.xlu0 %2068 }
 0xdf0   :  { %v2081_v27 = vmul.f32 0.03125, %v2069_v59 }
 0xdf2   :  { %v2087_v62 = vadd.f32 1e-05, %v2081_v27 }
 0xdf3   :  { %v2072_v53 = vpop.xlane.xlu1 %2071  ;;  %v2039_v31 = vpop.xlane.xlu0 %2038 }
 0xdf4   :  { %3354 = vrsqrt.f32 %v2087_v62  ;;  %v2082_v0 = vmul.f32 0.03125, %v2072_v53  ;;  %v2047_v2 = vmul.f32 0.03125, %v2039_v31 }
 0xdf6   :  { %v2088_v3 = vadd.f32 1e-05, %v2082_v0  ;;  %v3998_v1 = vsub.f32 %v2023_v7, %v2047_v2 }
 0xdf7   :  { %v2042_v4 = vpop.xlane.xlu1 %2041 }
 0xdf8   :  { %v3351_v8 = vpop.eup %3350  ;;  %3356 = vrsqrt.f32 %v2088_v3  ;;  %v2048_v10 = vmul.f32 0.03125, %v2042_v4  ;;  %v2059_v12 = vmul.f32 %v3998_v1, %v3998_v1 }
 0xdf9   :  { %v3353_v32 = vpop.eup %3352  ;;  %v2098_v14 = vmul.f32 %v3351_v8, %v2050_v28 }
 0xdfa   :  { %v4008_v5 = vsub.f32 %v3965_v30, %v2048_v10  ;;  %v2073_v15 = vsel %vm191_vm4, %v2059_v12, 0.0  ;;  %v2097_v16 = vmul.f32 %v3353_v32, %v2049_v63  ;;  %v2572_v10 = vld [vmem:[%s4133_s2 + $0x10e] ss:$0 sm:$0xff] }
 0xdfb   :  { %v2108_v19 = vmul.f32 %v4003_v9, %v2098_v14  ;;  %2074 = vadd.xlane.f32.xlu0 %v2073_v15 }
 0xdfc   :  { %v2060_v51 = vmul.f32 %v4008_v5, %v4008_v5  ;;  %v2107_v22 = vmul.f32 %v4003_v9, %v2097_v16 }
 0xdfd   :  { %v2118_v7 = vadd.f32 %v4014_v50, %v2108_v19 }
 0xdfe   :  { %v3355_v26 = vpop.eup %3354  ;;  %v2076_v29 = vsel %vm191_vm4, %v2060_v51, 0.0  ;;  %v2117_v30 = vadd.f32 %v4014_v50, %v2107_v22 }
 0xdff   :  { %2077 = vadd.xlane.f32.xlu1 %v2076_v29  ;;  %v2099_v24 = vmul.f32 %v3355_v26, %v3972_v39  ;;  %v1293_v39 = vld [vmem:[%s4133_s2 + $0x170] sm:$0xff] }
 0xe00   :  { %2986 = vmatprep.mubr.msk.f32.mxu0 %vm191_vm4, %v2117_v30  ;;  %v3193_v41 = vpack.c.bf16 %v1294_v40, %v1293_v39 }
 0xe01   :  { %2987 = vmatmul.mubr.msk.f32.vlgmr.msra.gmra.mrb[30].mxu0 %vm191_vm4, %v2118_v7  ;;  %v2109_v55 = vmul.f32 %v4003_v9, %v2099_v24 }
 0xe02   :  { %v3357_v60 = vpop.eup %3356  ;;  %3194 = vmatprep.subr.bf16.mxu1 %v3193_v41 }
 0xe03   :  { %v2119_v17 = vadd.f32 %v4014_v50, %v2109_v55  ;;  %v2100_v18 = vmul.f32 %v3357_v60, %v3977_v43  ;;  %3196 = vmatpush3.bf16.msra.mxu1 %v3193_v41  ;;  %v1296_v43 = vld [vmem:[%s4133_s2 + $0x188] sm:$0xff] }
 0xe04   :  { %v3197_v13 = vpack.c.bf16 %v1296_v43, %v1295_v42 }
 0xe05   :  { %2989 = vmatprep.mubr.msk.f32.mxu0 %vm191_vm4, %v2119_v17  ;;  %v2110_v28 = vmul.f32 %v4003_v9, %v2100_v18 }
 0xe06   :  { %3198 = vmatprep.subr.bf16.mxu1 %v3197_v13 }
 0xe07   :  { %v2120_v63 = vadd.f32 %v4014_v50, %v2110_v28  ;;  %3200 = vmatpush3.bf16.msra.mxu1 %v3197_v13 }
 0xe08   :  { %3202 = vmatprep.subr.bf16.mxu1 %v3201_v21 }
 0xe09   :  { %2990 = vmatmul.mubr.msk.f32.gmra.mrb[32].mxu0 %vm191_vm4, %v2120_v63 }
 0xe0b   :  { %3204 = vmatpush3.bf16.msra.mxu1 %v3201_v21 }
 0xe0c   :  { %3206 = vmatprep.subr.bf16.mxu1 %v3205_v48 }
 0xe0f   :  { %3208 = vmatpush3.bf16.msra.mxu1 %v3205_v48 }
 0xe10   :  { %3210 = vmatprep.subr.bf16.mxu1 %v3209_v44 }
 0xe13   :  { %3212 = vmatpush3.bf16.msra.mxu1 %v3209_v44 }
 0xe14   :  { %3214 = vmatprep.subr.bf16.mxu1 %v3213_v57 }
 0xe17   :  { %3216 = vmatpush3.bf16.msra.mxu1 %v3213_v57 }
 0xe88   :  { %v2075_v58 = vpop.xlane.xlu0 %2074 }
 0xe89   :  { %v2083_v52 = vmul.f32 0.03125, %v2075_v58 }
 0xe8b   :  { %v2089_v25 = vadd.f32 1e-05, %v2083_v52  ;;  %v2579_v52 = vld [vmem:[%s4133_s2 + $0x10f] ss:$0 sm:$0xff] }
 0xe8c   :  { %v2078_v54 = vpop.xlane.xlu1 %2077 }
 0xe8d   :  { %3358 = vrsqrt.f32 %v2089_v25  ;;  %v2084_v59 = vmul.f32 0.03125, %v2078_v54 }
 0xe8f   :  { %v2090_v27 = vadd.f32 1e-05, %v2084_v59 }
 0xe91   :  { %3360 = vrsqrt.f32 %v2090_v27 }
 0xe97   :  { %v3359_v62 = vpop.eup %3358 }
 0xe98   :  { %v2101_v53 = vmul.f32 %v3359_v62, %v3998_v1 }
 0xe9a   :  { %v2111_v31 = vmul.f32 %v4003_v9, %v2101_v53 }
 0xe9b   :  { %v3361_v0 = vpop.eup %3360 }
 0xe9c   :  { %v2121_v2 = vadd.f32 %v4014_v50, %v2111_v31  ;;  %v2102_v3 = vmul.f32 %v3361_v0, %v4008_v5 }
 0xe9e   :  { %2992 = vmatprep.mubr.msk.f32.mxu0 %vm191_vm4, %v2121_v2  ;;  %v2112_v4 = vmul.f32 %v4003_v9, %v2102_v3 }
 0xea0   :  { %v2122_v8 = vadd.f32 %v4014_v50, %v2112_v4  ;;  %v2371_v4 = vld [vmem:[%s4132_s1 + $0x60] sm:$0xff] }
 0xea2   :  { %2993 = vmatmul.mubr.msk.f32.gmra.mrb[34].mxu0 %vm191_vm4, %v2122_v8  ;;  %v2372_v8 = vld [vmem:[%s4132_s1 + $0x68] sm:$0xff] }
 0xed4   :  { %v2988_v1 = vpop.f32.mrb[30].mxu0 }
 0xed5   :  { %v2217_v12 = vadd.f32 %v2988_v1, %v2572_v10  ;;  %v2211_v32 = vpop.f32.mrb[31].mxu0  ;;  %v3403_v1 = vmov 0.0|0.0  }
 0xed6   :  { %v2212_v14 = vadd.f32 %v2572_v10, %v2211_v32  ;;  %3217 = vmatprep.subr.bf16.mxu1 %v3403_v1  ;;  %v2374_v32 = vld [vmem:[%s4132_s1 + $0x78] sm:$0xff] }
 0xed7   :  { %v2247_v15 = vmul.f32 0.70710677, %v2217_v12  ;;  %v2241_v55 = vmul.f32 0.5, %v2217_v12  ;;  %v2373_v12 = vld [vmem:[%s4132_s1 + $0x70] sm:$0xff] }
 0xed8   :  { %v2246_v16 = vmul.f32 0.70710677, %v2212_v14  ;;  %v2240_v7 = vmul.f32 0.5, %v2212_v14  ;;  %v3221_v14 = vpack.c.bf16 %v2374_v32, %v2373_v12 }
 0xed9   :  { %3362 = verf.f32 %v2247_v15  ;;  %v3405_v15 = vmov 0.0  }
 0xeda   :  { %3364 = verf.f32 %v2246_v16 }
 0xedc   :  { %v2991_v5 = vpop.f32.mrb[32].mxu0 }
 0xedd   :  { %v2227_v19 = vadd.f32 %v2991_v5, %v2572_v10  ;;  %v2221_v51 = vpop.f32.mrb[33].mxu0 }
 0xede   :  { %v2222_v9 = vadd.f32 %v2572_v10, %v2221_v51 }
 0xedf   :  { %v2249_v22 = vmul.f32 0.70710677, %v2227_v19  ;;  %v2243_v61 = vmul.f32 0.5, %v2227_v19 }
 0xee0   :  { %v2248_v50 = vmul.f32 0.70710677, %v2222_v9  ;;  %v2242_v6 = vmul.f32 0.5, %v2222_v9  ;;  %v2580_v9 = vld [vmem:[%s4132_s1 + $0x81] ss:$0 sm:$0xff] }
 0xee1   :  { %3366 = verf.f32 %v2249_v22 }
 0xee2   :  { %3368 = verf.f32 %v2248_v50  ;;  %v2581_v50 = vld [vmem:[%s4132_s1 + $0x82] ss:$0 sm:$0xff] }
 0xee3   :  { %v3363_v26 = vpop.eup %3362 }
 0xee4   :  { %v3365_v29 = vpop.eup %3364  ;;  %v2259_v30 = vadd.f32 1.0, %v3363_v26 }
 0xee5   :  { %v2258_v24 = vadd.f32 1.0, %v3365_v29 }
 0xee6   :  { %v2265_v17 = vmul.f32 %v2259_v30, %v2241_v55  ;;  %v2582_v30 = vld [vmem:[%s4132_s1 + $0x80] ss:$0 sm:$0xff] }
 0xee7   :  { %v2264_v60 = vmul.f32 %v2258_v24, %v2240_v7 }
 0xee9   :  { %3027 = vmatprep.mubr.f32.mxu1 %v2264_v60 }
 0xeea   :  { %3028 = vmatmul.mubr.f32.vlgmr.msra.gmra.mrb[36].mxu1 %v2265_v17 }
 0xeeb   :  { %v3367_v18 = vpop.eup %3366 }
 0xeec   :  { %v3369_v28 = vpop.eup %3368  ;;  %v2261_v63 = vadd.f32 1.0, %v3367_v18 }
 0xeed   :  { %v2260_v35 = vadd.f32 1.0, %v3369_v28 }
 0xeee   :  { %v2267_v36 = vmul.f32 %v2261_v63, %v2243_v61 }
 0xeef   :  { %v2266_v33 = vmul.f32 %v2260_v35, %v2242_v6 }
 0xef1   :  { %3030 = vmatprep.mubr.f32.mxu1 %v2266_v33 }
 0xef2   :  { %3031 = vmatmul.mubr.f32.gmra.mrb[38].mxu1 %v2267_v36 }
 0xf75   :  { %v2994_v37 = vpop.f32.mrb[34].mxu0 }
 0xf76   :  { %v2237_v39 = vadd.f32 %v2994_v37, %v2572_v10  ;;  %v2231_v40 = vpop.f32.mrb[35].mxu0 }
 0xf77   :  { %v2232_v41 = vadd.f32 %v2572_v10, %v2231_v40  ;;  %v3218_v10 = vpack.c.bf16 %v2372_v8, %v2371_v4 }
 0xf78   :  { %v2251_v42 = vmul.f32 0.70710677, %v2237_v39  ;;  %v2245_v47 = vmul.f32 0.5, %v2237_v39 }
 0xf79   :  { %v2250_v43 = vmul.f32 0.70710677, %v2232_v41  ;;  %v2244_v21 = vmul.f32 0.5, %v2232_v41  ;;  %3219 = vmatpush3.bf16.msra.mxu1 %v3218_v10 }
 0xf7a   :  { %3370 = verf.f32 %v2251_v42  ;;  %3220 = vmatprep.subr.bf16.mxu1 %v3403_v1 }
 0xf7b   :  { %3372 = verf.f32 %v2250_v43 }
 0xf7d   :  { %3222 = vmatpush3.bf16.msra.mxu1 %v3221_v14 }
 0xf84   :  { %v3371_v13 = vpop.eup %3370 }
 0xf85   :  { %v3373_v46 = vpop.eup %3372  ;;  %v2263_v20 = vadd.f32 1.0, %v3371_v13 }
 0xf86   :  { %v2262_v34 = vadd.f32 1.0, %v3373_v46 }
 0xf87   :  { %v2269_v38 = vmul.f32 %v2263_v20, %v2245_v47 }
 0xf88   :  { %v2268_v48 = vmul.f32 %v2262_v34, %v2244_v21 }
 0xf8a   :  { %3033 = vmatprep.mubr.f32.mxu1 %v2268_v48 }
 0xf8b   :  { %3034 = vmatmul.mubr.f32.gmra.mrb[40].mxu1 %v2269_v38 }
 0xf8c   :  { %3044 = vmatprep.mubr.msk.f32.mxu1 %vm3404_vm7, %v3405_v15 }
 0xfbd   :  { %v3029_v49 = vpop.f32.mrb[36].mxu1 }
 0xfbe   :  { %v2336_v44 = vpop.f32.mrb[37].mxu1 }
 0xfbf   :  { %v2361_v56 = vadd.f32 %v2336_v44, %v3953_v11 }
 0xfc1   :  { %v2367_v54 = vadd.f32 %v2579_v52, %v2361_v56 }
 0xfc5   :  { %v3032_v45 = vpop.f32.mrb[38].mxu1 }
 0xfc6   :  { %v2362_v57 = vadd.f32 %v3032_v45, %v3961_v23  ;;  %v2345_v58 = vpop.f32.mrb[39].mxu1 }
 0xfc8   :  { %v2368_v25 = vadd.f32 %v2579_v52, %v2362_v57 }
 0xfca   :  { %v2377_v59 = vrot.slane %v2368_v25, 7 }
 0xfcc   :  { %v2380_v27 = vsel %vm2379_vm5, %v2367_v54, %v2377_v59 }
 0xfcd   :  { %v2382_v62 = vsel %vm2381_vm6, %v2380_v27, 0.0 }
 0xfce   :  { %2383 = vadd.xlane.f32.xlu0 %v2382_v62 }
0x105b   :  { %v2384_v53 = vpop.xlane.xlu0 %2383 }
0x105c   :  { %v2385_v31 = vmul.f32 0.03125, %v2384_v53 }
0x105e   :  { %v2386_v0 = vsub.f32 %v2380_v27, %v2385_v31  ;;  %v3035_v2 = vpop.f32.mrb[40].mxu1 }
0x105f   :  { %v2354_v11 = vpop.f32.mrb[41].mxu1 }
0x1060   :  { %v2387_v3 = vmul.f32 %v2386_v0, %v2386_v0 }
0x1062   :  { %v2388_v23 = vsel %vm2381_vm6, %v2387_v3, 0.0 }
0x1063   :  { %2389 = vadd.xlane.f32.xlu1 %v2388_v23 }
0x10f0   :  { %v2390_v16 = vpop.xlane.xlu1 %2389 }
0x10f1   :  { %v2391_v5 = vmul.f32 0.03125, %v2390_v16 }
0x10f3   :  { %v2392_v19 = vadd.f32 1e-05, %v2391_v5 }
0x10f5   :  { %3374 = vrsqrt.f32 %v2392_v19 }
0x10ff   :  { %v3375_v51 = vpop.eup %3374 }
0x1100   :  { %v2394_v22 = vmul.f32 %v3375_v51, %v2386_v0 }
0x1102   :  { %v2399_v26 = vmul.f32 %v2580_v9, %v2394_v22 }
0x1104   :  { %v2404_v29 = vadd.f32 %v2581_v50, %v2399_v26 }
0x1106   :  { %3045 = vmatmul.mubr.msk.f32.vlgmr.msra.gmra.mrb[42].mxu1 %vm191_vm4, %v2404_v29 }
0x11d9   :  { %v2478_v7 = vpop.f32.mrb[42].mxu1 }
0x11da   :  { %v2479_v24 = vadd.f32 %v2582_v30, %v2478_v7  ;;  %v3046_v55 = vpop.f32.mrb[43].mxu1 }
0x11dc   :  { %2482 = vst [vmem:[#allocation2] sm:$0x3] %v2479_v24 }
0x11dd   :  { %3387 = shalt.err (!%p3384_p4)
}
0x11de   :  { %s3388_s28 = scalar_lea.hbm %s4134_s3, 32 }
0x11df   :  { %p3389_p5 = scmp.ne.s32.totalorder %s4134_s3, %s3388_s28  ;;  %p3392_p6 = scmp.lt.u32.totalorder %s3388_s28, %s4134_s3 }
0x11e1   :  { %p3394_p7 = pnand %p3392_p6, %p3389_p5 }
0x11e3   :  { %3397 = shalt.err (!%p3394_p7)
}
0x11e4   :  { %2492 = dma.vmem_to_hbm [thread:$0]  %s2490_s24, 32, %s4134_s3, [#allocation3]  }
0x11e5   :  { %3398 = dma.done.wait [#allocation3], 32  }
0x11e6   :  { %3399 = vsyncadd [#allocation3], 4294967264 }
0x11e7   :  { %2496 = vsyncpa [#allocation3], 1 }

</bundles_post_ra>
